<compile_context>
chip_gen: v5e
topology: v5e:2x2
jax: 0.10.0
libtpu: 0.0.40
codegen_flags: <defaults>
</compile_context>

<pallas_src>
import functools

import jax
import jax.numpy as jnp
from jax.experimental import pallas as pl
from jax.experimental.pallas import tpu as pltpu

_LN_EPS = 1e-5  # nn.LayerNorm default


def _erf(x):
    # Abramowitz & Stegun 7.1.26 rational approximation, max abs err ~1.5e-7.
    # Used instead of lax.erf so the kernel only needs exp/mul/add lowering.
    a1, a2, a3, a4, a5 = 0.254829592, -0.284496736, 1.421413741, -1.453152027, 1.061405429
    p = 0.3275911
    sgn = jnp.where(x < 0.0, -1.0, 1.0).astype(jnp.float32)
    ax = jnp.abs(x)
    t = 1.0 / (1.0 + p * ax)
    poly = ((((a5 * t + a4) * t + a3) * t + a2) * t + a1) * t
    y = 1.0 - poly * jnp.exp(-ax * ax)
    return sgn * y


def _gelu_exact(x):
    # nn.GELU default (exact, erf-based).
    return 0.5 * x * (1.0 + _erf(x * 0.7071067811865476))


def _layer_norm(x, w, b):
    mu = jnp.mean(x, axis=-1, keepdims=True)
    var = jnp.mean(jnp.square(x - mu), axis=-1, keepdims=True)
    return (x - mu) * jax.lax.rsqrt(var + _LN_EPS) * w + b


def _block_kernel(x_ref, mask_ref,
                  ln1_w_ref, ln1_b_ref,
                  wqkv_ref, bqkv_ref,
                  wproj_ref, bproj_ref,
                  ln2_w_ref, ln2_b_ref,
                  wfc1_ref, bfc1_ref,
                  wfc2_ref, bfc2_ref,
                  o_x_ref, o_attn_ref,
                  *, num_heads, scale):
    x = x_ref[0].astype(jnp.float32)                 # (N, C)
    N, C = x.shape
    hd = C // num_heads

    # ---- LayerNorm 1 ----
    xn = _layer_norm(x, ln1_w_ref[...], ln1_b_ref[...])

    # ---- qkv projection: one GEMM against the VMEM-resident weight ----
    qkv = jnp.dot(xn, wqkv_ref[...],
                  preferred_element_type=jnp.float32) + bqkv_ref[...]   # (N, 3C)
    q = qkv[:, 0:C]
    k = qkv[:, C:2 * C]
    v = qkv[:, 2 * C:3 * C]

    mask_row = mask_ref[0]                           # (1, N) key mask
    neg_inf = jnp.float32(-jnp.inf)

    wproj = wproj_ref[...]                           # (C, C)
    proj_acc = None
    # Static per-head loop: static slices only, no in-kernel transpose/concat.
    for h in range(num_heads):
        lo = h * hd
        qh = q[:, lo:lo + hd]
        kh = k[:, lo:lo + hd]
        vh = v[:, lo:lo + hd]
        # s = q @ k^T  (contract on head_dim, no explicit transpose)
        s = jax.lax.dot_general(qh, kh, (((1,), (1,)), ((), ())),
                                preferred_element_type=jnp.float32) * scale
        s = jnp.where(mask_row > 0.0, s, neg_inf)    # masked_fill(~mask, -inf)
        s_max = jnp.max(s, axis=-1, keepdims=True)
        e = jnp.exp(s - s_max)
        p = e / jnp.sum(e, axis=-1, keepdims=True)   # softmax
        o_attn_ref[0, h] = p.astype(o_attn_ref.dtype)
        oh = jnp.dot(p, vh, preferred_element_type=jnp.float32)         # (N, hd)
        # Fold the head straight into the output projection:
        # concat_h(o_h) @ Wproj == sum_h o_h @ Wproj[h*hd:(h+1)*hd, :]
        ph = jnp.dot(oh, wproj[lo:lo + hd, :],
                     preferred_element_type=jnp.float32)                # (N, C)
        proj_acc = ph if proj_acc is None else proj_acc + ph

    # ---- attention output projection + residual ----
    x1 = x + proj_acc + bproj_ref[...]

    # ---- LayerNorm 2 + MLP (fc1 -> GELU -> fc2) + residual ----
    x2n = _layer_norm(x1, ln2_w_ref[...], ln2_b_ref[...])
    h1 = jnp.dot(x2n, wfc1_ref[...],
                 preferred_element_type=jnp.float32) + bfc1_ref[...]     # (N, 4C)
    h1 = _gelu_exact(h1)
    h2 = jnp.dot(h1, wfc2_ref[...],
                 preferred_element_type=jnp.float32) + bfc2_ref[...]     # (N, C)

    o_x_ref[0] = (x1 + h2).astype(o_x_ref.dtype)


def vilt_block_forward(x, params, mask=None, *, num_heads, qk_scale=None):
    """Equivalent of Block.forward(x, mask) -> (x, attn).

    x:    (B, N, C) float32
    mask: (B, N) or None (1 = keep, 0 = mask out key positions)
    params: dict of weights already in GEMM layout:
        ln1_w/ln1_b (1,C), wqkv (C,3C), bqkv (1,3C), wproj (C,C), bproj (1,C),
        ln2_w/ln2_b (1,C), wfc1 (C,H), bfc1 (1,H), wfc2 (H,C), bfc2 (1,C)
    """
    B, N, C = x.shape
    hd = C // num_heads
    scale = float(qk_scale) if qk_scale is not None else hd ** (-0.5)
    hidden = params["wfc1"].shape[1]

    if mask is None:
        mask3 = jnp.ones((B, 1, N), dtype=jnp.float32)
    else:
        mask3 = mask.astype(jnp.float32).reshape(B, 1, N)

    kernel = functools.partial(_block_kernel, num_heads=num_heads, scale=scale)

    batch_map3 = lambda b: (b, 0, 0)
    const2 = lambda b: (0, 0)

    in_specs = [
        pl.BlockSpec((1, N, C), batch_map3),                 # x (per-batch block)
        pl.BlockSpec((1, 1, N), batch_map3),                 # mask
        pl.BlockSpec((1, C), const2), pl.BlockSpec((1, C), const2),          # ln1 w,b
        pl.BlockSpec((C, 3 * C), const2), pl.BlockSpec((1, 3 * C), const2),  # qkv w,b
        pl.BlockSpec((C, C), const2), pl.BlockSpec((1, C), const2),          # proj w,b
        pl.BlockSpec((1, C), const2), pl.BlockSpec((1, C), const2),          # ln2 w,b
        pl.BlockSpec((C, hidden), const2), pl.BlockSpec((1, hidden), const2),  # fc1 w,b
        pl.BlockSpec((hidden, C), const2), pl.BlockSpec((1, C), const2),       # fc2 w,b
    ]
    out_specs = [
        pl.BlockSpec((1, N, C), batch_map3),
        pl.BlockSpec((1, num_heads, N, N), lambda b: (b, 0, 0, 0)),
    ]
    out_shape = (
        jax.ShapeDtypeStruct((B, N, C), x.dtype),
        jax.ShapeDtypeStruct((B, num_heads, N, N), x.dtype),
    )

    # Advisory cost estimate so XLA schedules neighbors around the custom call.
    flops = B * (2 * N * C * 3 * C          # qkv
                 + 4 * N * N * C            # q@k^T and attn@v (all heads)
                 + 2 * N * C * C            # output projection
                 + 4 * N * C * hidden)      # fc1 + fc2
    transcendentals = B * (num_heads * N * N + N * hidden)
    bytes_accessed = 4 * (2 * B * N * C + B * num_heads * N * N + B * N
                          + 3 * C * C + 3 * C + C * C + C
                          + 2 * C * hidden + hidden + 6 * C)

    return pl.pallas_call(
        kernel,
        out_shape=out_shape,
        grid_spec=pltpu.PrefetchScalarGridSpec(
            num_scalar_prefetch=0,
            grid=(B,),
            in_specs=in_specs,
            out_specs=out_specs,
        ),
        compiler_params=pltpu.CompilerParams(
            dimension_semantics=("parallel",)),        # megacore split on v7x
        cost_estimate=pl.CostEstimate(
            flops=flops,
            transcendentals=transcendentals,
            bytes_accessed=bytes_accessed),
    )(x, mask3,
      params["ln1_w"], params["ln1_b"],
      params["wqkv"], params["bqkv"],
      params["wproj"], params["bproj"],
      params["ln2_w"], params["ln2_b"],
      params["wfc1"], params["bfc1"],
      params["wfc2"], params["bfc2"])


# ------------------------- pure-JAX reference (for the check) -------------------------
def _block_reference(x, params, mask, num_heads, scale):
    def ln(y, w, b):
        mu = y.mean(-1, keepdims=True)
        var = jnp.square(y - mu).mean(-1, keepdims=True)
        return (y - mu) / jnp.sqrt(var + _LN_EPS) * w.reshape(1, 1, -1) + b.reshape(1, 1, -1)

    B, N, C = x.shape
    hd = C // num_heads
    xn = ln(x, params["ln1_w"], params["ln1_b"])
    qkv = xn @ params["wqkv"] + params["bqkv"]
    qkv = qkv.reshape(B, N, 3, num_heads, hd).transpose(2, 0, 3, 1, 4)
    q, k, v = qkv[0], qkv[1], qkv[2]
    attn = jnp.einsum("bhqd,bhkd->bhqk", q, k) * scale
    if mask is not None:
        attn = jnp.where(mask[:, None, None, :] > 0, attn, -jnp.inf)
    attn = jax.nn.softmax(attn, axis=-1)
    o = jnp.einsum("bhqk,bhkd->bhqd", attn, v).transpose(0, 2, 1, 3).reshape(B, N, C)
    o = o @ params["wproj"] + params["bproj"]
    x1 = x + o
    x2n = ln(x1, params["ln2_w"], params["ln2_b"])
    h = jax.nn.gelu(x2n @ params["wfc1"] + params["bfc1"], approximate=False)
    h = h @ params["wfc2"] + params["bfc2"]
    return x1 + h, attn


def _init_params(key, C, hidden, dtype=jnp.float32):
    ks = jax.random.split(key, 10)
    g = lambda k, shape, s=0.02: jax.random.normal(k, shape, dtype) * s
    return {
        "ln1_w": 1.0 + g(ks[0], (1, C), 0.05),
        "ln1_b": g(ks[1], (1, C), 0.05),
        "wqkv": g(ks[2], (C, 3 * C)),
        "bqkv": jnp.zeros((1, 3 * C), dtype),          # qkv_bias=False (module default)
        "wproj": g(ks[3], (C, C)),
        "bproj": g(ks[4], (1, C)),
        "ln2_w": 1.0 + g(ks[5], (1, C), 0.05),
        "ln2_b": g(ks[6], (1, C), 0.05),
        "wfc1": g(ks[7], (C, hidden)),
        "bfc1": g(ks[8], (1, hidden)),
        "wfc2": g(ks[9], (hidden, C)),
        "bfc2": jnp.zeros((1, C), dtype),
    }


if __name__ == "__main__":
    # Small shapes consistent with the module: batch=2, seq=8, dim=32, heads=4.
    B, N, C = 2, 8, 32
    num_heads = 4
    hidden = int(C * 4.0)

    key = jax.random.PRNGKey(0)
    kx, kp = jax.random.split(key, 2)
    x = jax.random.normal(kx, (B, N, C), dtype=jnp.float32)
    params = _init_params(kp, C, hidden)

    # Token mask like ViLT (1 = keep, 0 = pad); last two tokens of batch 1 masked.
    mask = jnp.ones((B, N), dtype=jnp.float32).at[1, N - 2:].set(0.0)

    out_x, out_attn = vilt_block_forward(x, params, mask, num_heads=num_heads)
    out_x = jax.block_until_ready(out_x)
    out_attn = jax.block_until_ready(out_attn)

    ref_x, ref_attn = _block_reference(x, params, mask, num_heads, (C // num_heads) ** (-0.5))

    assert out_x.shape == (B, N, C), out_x.shape
    assert out_attn.shape == (B, num_heads, N, N), out_attn.shape
    assert jnp.allclose(out_x, ref_x, atol=1e-4, rtol=1e-4), \
        float(jnp.max(jnp.abs(out_x - ref_x)))
    assert jnp.allclose(out_attn, ref_attn, atol=1e-4, rtol=1e-4), \
        float(jnp.max(jnp.abs(out_attn - ref_attn)))

    print("KERNEL_OK")
</pallas_src>

<mosaic_0001>
module attributes {stable_mosaic.version = 11 : i64} {
  func.func @_block_kernel(%arg0: i32, %arg1: memref<1x8x32xf32, #tpu.memory_space<vmem>>, %arg2: memref<1x1x8xf32, #tpu.memory_space<vmem>>, %arg3: memref<1x32xf32, #tpu.memory_space<vmem>>, %arg4: memref<1x32xf32, #tpu.memory_space<vmem>>, %arg5: memref<32x96xf32, #tpu.memory_space<vmem>>, %arg6: memref<1x96xf32, #tpu.memory_space<vmem>>, %arg7: memref<32x32xf32, #tpu.memory_space<vmem>>, %arg8: memref<1x32xf32, #tpu.memory_space<vmem>>, %arg9: memref<1x32xf32, #tpu.memory_space<vmem>>, %arg10: memref<1x32xf32, #tpu.memory_space<vmem>>, %arg11: memref<32x128xf32, #tpu.memory_space<vmem>>, %arg12: memref<1x128xf32, #tpu.memory_space<vmem>>, %arg13: memref<128x32xf32, #tpu.memory_space<vmem>>, %arg14: memref<1x32xf32, #tpu.memory_space<vmem>>, %arg15: memref<1x8x32xf32, #tpu.memory_space<vmem>>, %arg16: memref<1x4x8x8xf32, #tpu.memory_space<vmem>>) attributes {dimension_semantics = [#tpu.dimension_semantics<parallel>], iteration_bounds = array<i64: 2>, scalar_prefetch = 0 : i64, scratch_operands = 0 : i64, tpu.core_type = #tpu.core_type<tc>, window_params = [{transform_indices = @transform_0, window_bounds = array<i64: 1, 8, 32>}, {transform_indices = @transform_1, window_bounds = array<i64: 1, 1, 8>}, {pipeline_mode = #tpu.pipeline_mode<synchronous>, transform_indices = @transform_2, window_bounds = array<i64: 1, 32>}, {pipeline_mode = #tpu.pipeline_mode<synchronous>, transform_indices = @transform_3, window_bounds = array<i64: 1, 32>}, {pipeline_mode = #tpu.pipeline_mode<synchronous>, transform_indices = @transform_4, window_bounds = array<i64: 32, 96>}, {pipeline_mode = #tpu.pipeline_mode<synchronous>, transform_indices = @transform_5, window_bounds = array<i64: 1, 96>}, {pipeline_mode = #tpu.pipeline_mode<synchronous>, transform_indices = @transform_6, window_bounds = array<i64: 32, 32>}, {pipeline_mode = #tpu.pipeline_mode<synchronous>, transform_indices = @transform_7, window_bounds = array<i64: 1, 32>}, {pipeline_mode = #tpu.pipeline_mode<synchronous>, transform_indices = @transform_8, window_bounds = array<i64: 1, 32>}, {pipeline_mode = #tpu.pipeline_mode<synchronous>, transform_indices = @transform_9, window_bounds = array<i64: 1, 32>}, {pipeline_mode = #tpu.pipeline_mode<synchronous>, transform_indices = @transform_10, window_bounds = array<i64: 32, 128>}, {pipeline_mode = #tpu.pipeline_mode<synchronous>, transform_indices = @transform_11, window_bounds = array<i64: 1, 128>}, {pipeline_mode = #tpu.pipeline_mode<synchronous>, transform_indices = @transform_12, window_bounds = array<i64: 128, 32>}, {pipeline_mode = #tpu.pipeline_mode<synchronous>, transform_indices = @transform_13, window_bounds = array<i64: 1, 32>}, {transform_indices = @transform_14, window_bounds = array<i64: 1, 8, 32>}, {transform_indices = @transform_15, window_bounds = array<i64: 1, 4, 8, 8>}]} {
    %c0 = arith.constant 0 : index
    %c0_0 = arith.constant 0 : index
    %c0_1 = arith.constant 0 : index
    %0 = vector.load %arg1[%c0, %c0_0, %c0_1] : memref<1x8x32xf32, #tpu.memory_space<vmem>>, vector<1x8x32xf32>
    %1 = vector.shape_cast %0 : vector<1x8x32xf32> to vector<8x32xf32>
    %c0_2 = arith.constant 0 : index
    %c0_3 = arith.constant 0 : index
    %2 = vector.load %arg3[%c0_2, %c0_3] : memref<1x32xf32, #tpu.memory_space<vmem>>, vector<1x32xf32>
    %c0_4 = arith.constant 0 : index
    %c0_5 = arith.constant 0 : index
    %3 = vector.load %arg4[%c0_4, %c0_5] : memref<1x32xf32, #tpu.memory_space<vmem>>, vector<1x32xf32>
    %cst = arith.constant dense<0.000000e+00> : vector<8xf32>
    %4 = vector.multi_reduction <add>, %1, %cst [1] : vector<8x32xf32> to vector<8xf32>
    %5 = vector.shape_cast %4 : vector<8xf32> to vector<8x1xf32>
    %cst_6 = arith.constant 3.200000e+01 : f32
    %6 = vector.broadcast %cst_6 : f32 to vector<8x1xf32>
    %7 = arith.divf %5, %6 : vector<8x1xf32>
    %8 = vector.broadcast %7 : vector<8x1xf32> to vector<8x32xf32>
    %9 = arith.subf %1, %8 : vector<8x32xf32>
    %10 = arith.mulf %9, %9 : vector<8x32xf32>
    %cst_7 = arith.constant dense<0.000000e+00> : vector<8xf32>
    %11 = vector.multi_reduction <add>, %10, %cst_7 [1] : vector<8x32xf32> to vector<8xf32>
    %12 = vector.shape_cast %11 : vector<8xf32> to vector<8x1xf32>
    %cst_8 = arith.constant 3.200000e+01 : f32
    %13 = vector.broadcast %cst_8 : f32 to vector<8x1xf32>
    %14 = arith.divf %12, %13 : vector<8x1xf32>
    %15 = vector.broadcast %7 : vector<8x1xf32> to vector<8x32xf32>
    %16 = arith.subf %1, %15 : vector<8x32xf32>
    %cst_9 = arith.constant 9.99999974E-6 : f32
    %17 = vector.broadcast %cst_9 : f32 to vector<8x1xf32>
    %18 = arith.addf %14, %17 : vector<8x1xf32>
    %19 = math.rsqrt %18 : vector<8x1xf32>
    %20 = vector.broadcast %19 : vector<8x1xf32> to vector<8x32xf32>
    %21 = arith.mulf %16, %20 : vector<8x32xf32>
    %22 = vector.broadcast %2 : vector<1x32xf32> to vector<8x32xf32>
    %23 = arith.mulf %21, %22 : vector<8x32xf32>
    %24 = vector.broadcast %3 : vector<1x32xf32> to vector<8x32xf32>
    %25 = arith.addf %23, %24 : vector<8x32xf32>
    %c0_10 = arith.constant 0 : index
    %c0_11 = arith.constant 0 : index
    %26 = vector.load %arg5[%c0_10, %c0_11] : memref<32x96xf32, #tpu.memory_space<vmem>>, vector<32x96xf32>
    %cst_12 = arith.constant dense<0.000000e+00> : vector<8x96xf32>
    %27 = tpu.matmul %25, %26, %cst_12 {dimension_numbers = #tpu.dot_dimension_numbers<[1], [0], [0], [1], [0, 0, 1, 1], [], []>} : vector<8x32xf32>, vector<32x96xf32>, vector<8x96xf32> -> vector<8x96xf32>
    %c0_13 = arith.constant 0 : index
    %c0_14 = arith.constant 0 : index
    %28 = vector.load %arg6[%c0_13, %c0_14] : memref<1x96xf32, #tpu.memory_space<vmem>>, vector<1x96xf32>
    %29 = vector.broadcast %28 : vector<1x96xf32> to vector<8x96xf32>
    %30 = arith.addf %27, %29 : vector<8x96xf32>
    %31 = vector.extract_strided_slice %30 {offsets = [0, 0], sizes = [8, 32], strides = [1, 1]} : vector<8x96xf32> to vector<8x32xf32>
    %32 = vector.extract_strided_slice %30 {offsets = [0, 32], sizes = [8, 32], strides = [1, 1]} : vector<8x96xf32> to vector<8x32xf32>
    %33 = vector.extract_strided_slice %30 {offsets = [0, 64], sizes = [8, 32], strides = [1, 1]} : vector<8x96xf32> to vector<8x32xf32>
    %c0_15 = arith.constant 0 : index
    %c0_16 = arith.constant 0 : index
    %c0_17 = arith.constant 0 : index
    %34 = vector.load %arg2[%c0_15, %c0_16, %c0_17] : memref<1x1x8xf32, #tpu.memory_space<vmem>>, vector<1x1x8xf32>
    %35 = vector.shape_cast %34 : vector<1x1x8xf32> to vector<1x8xf32>
    %c0_18 = arith.constant 0 : index
    %c0_19 = arith.constant 0 : index
    %36 = vector.load %arg7[%c0_18, %c0_19] : memref<32x32xf32, #tpu.memory_space<vmem>>, vector<32x32xf32>
    %37 = vector.extract_strided_slice %31 {offsets = [0, 0], sizes = [8, 8], strides = [1, 1]} : vector<8x32xf32> to vector<8x8xf32>
    %38 = vector.extract_strided_slice %32 {offsets = [0, 0], sizes = [8, 8], strides = [1, 1]} : vector<8x32xf32> to vector<8x8xf32>
    %39 = vector.extract_strided_slice %33 {offsets = [0, 0], sizes = [8, 8], strides = [1, 1]} : vector<8x32xf32> to vector<8x8xf32>
    %cst_20 = arith.constant dense<0.000000e+00> : vector<8x8xf32>
    %40 = tpu.matmul %37, %38, %cst_20 {dimension_numbers = #tpu.dot_dimension_numbers<[1], [1], [0], [0], [0, 0, 1, 0], [], []>} : vector<8x8xf32>, vector<8x8xf32>, vector<8x8xf32> -> vector<8x8xf32>
    %cst_21 = arith.constant 0.353553385 : f32
    %41 = vector.broadcast %cst_21 : f32 to vector<8x8xf32>
    %42 = arith.mulf %40, %41 : vector<8x8xf32>
    %cst_22 = arith.constant 0.000000e+00 : f32
    %43 = vector.broadcast %cst_22 : f32 to vector<1x8xf32>
    %44 = arith.cmpf ogt, %35, %43 : vector<1x8xf32>
    %cst_23 = arith.constant 0xFF800000 : f32
    %45 = vector.shape_cast %44 : vector<1x8xi1> to vector<1x8xi1>
    %46 = vector.broadcast %45 : vector<1x8xi1> to vector<8x8xi1>
    %47 = vector.broadcast %cst_23 : f32 to vector<8x8xf32>
    %48 = arith.select %46, %42, %47 : vector<8x8xi1>, vector<8x8xf32>
    %cst_24 = arith.constant dense<0xFF800000> : vector<8xf32>
    %49 = vector.multi_reduction <maximumf>, %48, %cst_24 [1] : vector<8x8xf32> to vector<8xf32>
    %50 = vector.shape_cast %49 : vector<8xf32> to vector<8x1xf32>
    %51 = vector.broadcast %50 : vector<8x1xf32> to vector<8x8xf32>
    %52 = arith.subf %48, %51 : vector<8x8xf32>
    %53 = math.exp %52 : vector<8x8xf32>
    %cst_25 = arith.constant dense<0.000000e+00> : vector<8xf32>
    %54 = vector.multi_reduction <add>, %53, %cst_25 [1] : vector<8x8xf32> to vector<8xf32>
    %55 = vector.shape_cast %54 : vector<8xf32> to vector<8x1xf32>
    %56 = vector.broadcast %55 : vector<8x1xf32> to vector<8x8xf32>
    %57 = arith.divf %53, %56 : vector<8x8xf32>
    %c0_26 = arith.constant 0 : index
    %c0_27 = arith.constant 0 : index
    %c0_28 = arith.constant 0 : index
    %c0_29 = arith.constant 0 : index
    %58 = vector.load %arg16[%c0_26, %c0_27, %c0_28, %c0_29] : memref<1x4x8x8xf32, #tpu.memory_space<vmem>>, vector<1x1x8x8xf32>
    %59 = vector.shape_cast %58 : vector<1x1x8x8xf32> to vector<8x8xf32>
    %60 = vector.shape_cast %57 : vector<8x8xf32> to vector<1x1x8x8xf32>
    tpu.vector_store %arg16[%c0_26, %c0_27, %c0_28, %c0_29], %60 {strides = array<i32>} : memref<1x4x8x8xf32, #tpu.memory_space<vmem>>, vector<1x1x8x8xf32>,
    %cst_30 = arith.constant dense<0.000000e+00> : vector<8x8xf32>
    %61 = tpu.matmul %57, %39, %cst_30 {dimension_numbers = #tpu.dot_dimension_numbers<[1], [0], [0], [1], [0, 0, 1, 1], [], []>} : vector<8x8xf32>, vector<8x8xf32>, vector<8x8xf32> -> vector<8x8xf32>
    %62 = vector.extract_strided_slice %36 {offsets = [0, 0], sizes = [8, 32], strides = [1, 1]} : vector<32x32xf32> to vector<8x32xf32>
    %cst_31 = arith.constant dense<0.000000e+00> : vector<8x32xf32>
    %63 = tpu.matmul %61, %62, %cst_31 {dimension_numbers = #tpu.dot_dimension_numbers<[1], [0], [0], [1], [0, 0, 1, 1], [], []>} : vector<8x8xf32>, vector<8x32xf32>, vector<8x32xf32> -> vector<8x32xf32>
    %64 = vector.extract_strided_slice %31 {offsets = [0, 8], sizes = [8, 8], strides = [1, 1]} : vector<8x32xf32> to vector<8x8xf32>
    %65 = vector.extract_strided_slice %32 {offsets = [0, 8], sizes = [8, 8], strides = [1, 1]} : vector<8x32xf32> to vector<8x8xf32>
    %66 = vector.extract_strided_slice %33 {offsets = [0, 8], sizes = [8, 8], strides = [1, 1]} : vector<8x32xf32> to vector<8x8xf32>
    %cst_32 = arith.constant dense<0.000000e+00> : vector<8x8xf32>
    %67 = tpu.matmul %64, %65, %cst_32 {dimension_numbers = #tpu.dot_dimension_numbers<[1], [1], [0], [0], [0, 0, 1, 0], [], []>} : vector<8x8xf32>, vector<8x8xf32>, vector<8x8xf32> -> vector<8x8xf32>
    %cst_33 = arith.constant 0.353553385 : f32
    %68 = vector.broadcast %cst_33 : f32 to vector<8x8xf32>
    %69 = arith.mulf %67, %68 : vector<8x8xf32>
    %cst_34 = arith.constant 0.000000e+00 : f32
    %70 = vector.broadcast %cst_34 : f32 to vector<1x8xf32>
    %71 = arith.cmpf ogt, %35, %70 : vector<1x8xf32>
    %cst_35 = arith.constant 0xFF800000 : f32
    %72 = vector.shape_cast %71 : vector<1x8xi1> to vector<1x8xi1>
    %73 = vector.broadcast %72 : vector<1x8xi1> to vector<8x8xi1>
    %74 = vector.broadcast %cst_35 : f32 to vector<8x8xf32>
    %75 = arith.select %73, %69, %74 : vector<8x8xi1>, vector<8x8xf32>
    %cst_36 = arith.constant dense<0xFF800000> : vector<8xf32>
    %76 = vector.multi_reduction <maximumf>, %75, %cst_36 [1] : vector<8x8xf32> to vector<8xf32>
    %77 = vector.shape_cast %76 : vector<8xf32> to vector<8x1xf32>
    %78 = vector.broadcast %77 : vector<8x1xf32> to vector<8x8xf32>
    %79 = arith.subf %75, %78 : vector<8x8xf32>
    %80 = math.exp %79 : vector<8x8xf32>
    %cst_37 = arith.constant dense<0.000000e+00> : vector<8xf32>
    %81 = vector.multi_reduction <add>, %80, %cst_37 [1] : vector<8x8xf32> to vector<8xf32>
    %82 = vector.shape_cast %81 : vector<8xf32> to vector<8x1xf32>
    %83 = vector.broadcast %82 : vector<8x1xf32> to vector<8x8xf32>
    %84 = arith.divf %80, %83 : vector<8x8xf32>
    %c0_38 = arith.constant 0 : index
    %c1 = arith.constant 1 : index
    %c0_39 = arith.constant 0 : index
    %c0_40 = arith.constant 0 : index
    %85 = vector.load %arg16[%c0_38, %c1, %c0_39, %c0_40] : memref<1x4x8x8xf32, #tpu.memory_space<vmem>>, vector<1x1x8x8xf32>
    %86 = vector.shape_cast %85 : vector<1x1x8x8xf32> to vector<8x8xf32>
    %87 = vector.shape_cast %84 : vector<8x8xf32> to vector<1x1x8x8xf32>
    tpu.vector_store %arg16[%c0_38, %c1, %c0_39, %c0_40], %87 {strides = array<i32>} : memref<1x4x8x8xf32, #tpu.memory_space<vmem>>, vector<1x1x8x8xf32>,
    %cst_41 = arith.constant dense<0.000000e+00> : vector<8x8xf32>
    %88 = tpu.matmul %84, %66, %cst_41 {dimension_numbers = #tpu.dot_dimension_numbers<[1], [0], [0], [1], [0, 0, 1, 1], [], []>} : vector<8x8xf32>, vector<8x8xf32>, vector<8x8xf32> -> vector<8x8xf32>
    %89 = vector.extract_strided_slice %36 {offsets = [8, 0], sizes = [8, 32], strides = [1, 1]} : vector<32x32xf32> to vector<8x32xf32>
    %cst_42 = arith.constant dense<0.000000e+00> : vector<8x32xf32>
    %90 = tpu.matmul %88, %89, %cst_42 {dimension_numbers = #tpu.dot_dimension_numbers<[1], [0], [0], [1], [0, 0, 1, 1], [], []>} : vector<8x8xf32>, vector<8x32xf32>, vector<8x32xf32> -> vector<8x32xf32>
    %91 = arith.addf %63, %90 : vector<8x32xf32>
    %92 = vector.extract_strided_slice %31 {offsets = [0, 16], sizes = [8, 8], strides = [1, 1]} : vector<8x32xf32> to vector<8x8xf32>
    %93 = vector.extract_strided_slice %32 {offsets = [0, 16], sizes = [8, 8], strides = [1, 1]} : vector<8x32xf32> to vector<8x8xf32>
    %94 = vector.extract_strided_slice %33 {offsets = [0, 16], sizes = [8, 8], strides = [1, 1]} : vector<8x32xf32> to vector<8x8xf32>
    %cst_43 = arith.constant dense<0.000000e+00> : vector<8x8xf32>
    %95 = tpu.matmul %92, %93, %cst_43 {dimension_numbers = #tpu.dot_dimension_numbers<[1], [1], [0], [0], [0, 0, 1, 0], [], []>} : vector<8x8xf32>, vector<8x8xf32>, vector<8x8xf32> -> vector<8x8xf32>
    %cst_44 = arith.constant 0.353553385 : f32
    %96 = vector.broadcast %cst_44 : f32 to vector<8x8xf32>
    %97 = arith.mulf %95, %96 : vector<8x8xf32>
    %cst_45 = arith.constant 0.000000e+00 : f32
    %98 = vector.broadcast %cst_45 : f32 to vector<1x8xf32>
    %99 = arith.cmpf ogt, %35, %98 : vector<1x8xf32>
    %cst_46 = arith.constant 0xFF800000 : f32
    %100 = vector.shape_cast %99 : vector<1x8xi1> to vector<1x8xi1>
    %101 = vector.broadcast %100 : vector<1x8xi1> to vector<8x8xi1>
    %102 = vector.broadcast %cst_46 : f32 to vector<8x8xf32>
    %103 = arith.select %101, %97, %102 : vector<8x8xi1>, vector<8x8xf32>
    %cst_47 = arith.constant dense<0xFF800000> : vector<8xf32>
    %104 = vector.multi_reduction <maximumf>, %103, %cst_47 [1] : vector<8x8xf32> to vector<8xf32>
    %105 = vector.shape_cast %104 : vector<8xf32> to vector<8x1xf32>
    %106 = vector.broadcast %105 : vector<8x1xf32> to vector<8x8xf32>
    %107 = arith.subf %103, %106 : vector<8x8xf32>
    %108 = math.exp %107 : vector<8x8xf32>
    %cst_48 = arith.constant dense<0.000000e+00> : vector<8xf32>
    %109 = vector.multi_reduction <add>, %108, %cst_48 [1] : vector<8x8xf32> to vector<8xf32>
    %110 = vector.shape_cast %109 : vector<8xf32> to vector<8x1xf32>
    %111 = vector.broadcast %110 : vector<8x1xf32> to vector<8x8xf32>
    %112 = arith.divf %108, %111 : vector<8x8xf32>
    %c0_49 = arith.constant 0 : index
    %c2 = arith.constant 2 : index
    %c0_50 = arith.constant 0 : index
    %c0_51 = arith.constant 0 : index
    %113 = vector.load %arg16[%c0_49, %c2, %c0_50, %c0_51] : memref<1x4x8x8xf32, #tpu.memory_space<vmem>>, vector<1x1x8x8xf32>
    %114 = vector.shape_cast %113 : vector<1x1x8x8xf32> to vector<8x8xf32>
    %115 = vector.shape_cast %112 : vector<8x8xf32> to vector<1x1x8x8xf32>
    tpu.vector_store %arg16[%c0_49, %c2, %c0_50, %c0_51], %115 {strides = array<i32>} : memref<1x4x8x8xf32, #tpu.memory_space<vmem>>, vector<1x1x8x8xf32>,
    %cst_52 = arith.constant dense<0.000000e+00> : vector<8x8xf32>
    %116 = tpu.matmul %112, %94, %cst_52 {dimension_numbers = #tpu.dot_dimension_numbers<[1], [0], [0], [1], [0, 0, 1, 1], [], []>} : vector<8x8xf32>, vector<8x8xf32>, vector<8x8xf32> -> vector<8x8xf32>
    %117 = vector.extract_strided_slice %36 {offsets = [16, 0], sizes = [8, 32], strides = [1, 1]} : vector<32x32xf32> to vector<8x32xf32>
    %cst_53 = arith.constant dense<0.000000e+00> : vector<8x32xf32>
    %118 = tpu.matmul %116, %117, %cst_53 {dimension_numbers = #tpu.dot_dimension_numbers<[1], [0], [0], [1], [0, 0, 1, 1], [], []>} : vector<8x8xf32>, vector<8x32xf32>, vector<8x32xf32> -> vector<8x32xf32>
    %119 = arith.addf %91, %118 : vector<8x32xf32>
    %120 = vector.extract_strided_slice %31 {offsets = [0, 24], sizes = [8, 8], strides = [1, 1]} : vector<8x32xf32> to vector<8x8xf32>
    %121 = vector.extract_strided_slice %32 {offsets = [0, 24], sizes = [8, 8], strides = [1, 1]} : vector<8x32xf32> to vector<8x8xf32>
    %122 = vector.extract_strided_slice %33 {offsets = [0, 24], sizes = [8, 8], strides = [1, 1]} : vector<8x32xf32> to vector<8x8xf32>
    %cst_54 = arith.constant dense<0.000000e+00> : vector<8x8xf32>
    %123 = tpu.matmul %120, %121, %cst_54 {dimension_numbers = #tpu.dot_dimension_numbers<[1], [1], [0], [0], [0, 0, 1, 0], [], []>} : vector<8x8xf32>, vector<8x8xf32>, vector<8x8xf32> -> vector<8x8xf32>
    %cst_55 = arith.constant 0.353553385 : f32
    %124 = vector.broadcast %cst_55 : f32 to vector<8x8xf32>
    %125 = arith.mulf %123, %124 : vector<8x8xf32>
    %cst_56 = arith.constant 0.000000e+00 : f32
    %126 = vector.broadcast %cst_56 : f32 to vector<1x8xf32>
    %127 = arith.cmpf ogt, %35, %126 : vector<1x8xf32>
    %cst_57 = arith.constant 0xFF800000 : f32
    %128 = vector.shape_cast %127 : vector<1x8xi1> to vector<1x8xi1>
    %129 = vector.broadcast %128 : vector<1x8xi1> to vector<8x8xi1>
    %130 = vector.broadcast %cst_57 : f32 to vector<8x8xf32>
    %131 = arith.select %129, %125, %130 : vector<8x8xi1>, vector<8x8xf32>
    %cst_58 = arith.constant dense<0xFF800000> : vector<8xf32>
    %132 = vector.multi_reduction <maximumf>, %131, %cst_58 [1] : vector<8x8xf32> to vector<8xf32>
    %133 = vector.shape_cast %132 : vector<8xf32> to vector<8x1xf32>
    %134 = vector.broadcast %133 : vector<8x1xf32> to vector<8x8xf32>
    %135 = arith.subf %131, %134 : vector<8x8xf32>
    %136 = math.exp %135 : vector<8x8xf32>
    %cst_59 = arith.constant dense<0.000000e+00> : vector<8xf32>
    %137 = vector.multi_reduction <add>, %136, %cst_59 [1] : vector<8x8xf32> to vector<8xf32>
    %138 = vector.shape_cast %137 : vector<8xf32> to vector<8x1xf32>
    %139 = vector.broadcast %138 : vector<8x1xf32> to vector<8x8xf32>
    %140 = arith.divf %136, %139 : vector<8x8xf32>
    %c0_60 = arith.constant 0 : index
    %c3 = arith.constant 3 : index
    %c0_61 = arith.constant 0 : index
    %c0_62 = arith.constant 0 : index
    %141 = vector.load %arg16[%c0_60, %c3, %c0_61, %c0_62] : memref<1x4x8x8xf32, #tpu.memory_space<vmem>>, vector<1x1x8x8xf32>
    %142 = vector.shape_cast %141 : vector<1x1x8x8xf32> to vector<8x8xf32>
    %143 = vector.shape_cast %140 : vector<8x8xf32> to vector<1x1x8x8xf32>
    tpu.vector_store %arg16[%c0_60, %c3, %c0_61, %c0_62], %143 {strides = array<i32>} : memref<1x4x8x8xf32, #tpu.memory_space<vmem>>, vector<1x1x8x8xf32>,
    %cst_63 = arith.constant dense<0.000000e+00> : vector<8x8xf32>
    %144 = tpu.matmul %140, %122, %cst_63 {dimension_numbers = #tpu.dot_dimension_numbers<[1], [0], [0], [1], [0, 0, 1, 1], [], []>} : vector<8x8xf32>, vector<8x8xf32>, vector<8x8xf32> -> vector<8x8xf32>
    %145 = vector.extract_strided_slice %36 {offsets = [24, 0], sizes = [8, 32], strides = [1, 1]} : vector<32x32xf32> to vector<8x32xf32>
    %cst_64 = arith.constant dense<0.000000e+00> : vector<8x32xf32>
    %146 = tpu.matmul %144, %145, %cst_64 {dimension_numbers = #tpu.dot_dimension_numbers<[1], [0], [0], [1], [0, 0, 1, 1], [], []>} : vector<8x8xf32>, vector<8x32xf32>, vector<8x32xf32> -> vector<8x32xf32>
    %147 = arith.addf %119, %146 : vector<8x32xf32>
    %148 = arith.addf %1, %147 : vector<8x32xf32>
    %c0_65 = arith.constant 0 : index
    %c0_66 = arith.constant 0 : index
    %149 = vector.load %arg8[%c0_65, %c0_66] : memref<1x32xf32, #tpu.memory_space<vmem>>, vector<1x32xf32>
    %150 = vector.broadcast %149 : vector<1x32xf32> to vector<8x32xf32>
    %151 = arith.addf %148, %150 : vector<8x32xf32>
    %c0_67 = arith.constant 0 : index
    %c0_68 = arith.constant 0 : index
    %152 = vector.load %arg9[%c0_67, %c0_68] : memref<1x32xf32, #tpu.memory_space<vmem>>, vector<1x32xf32>
    %c0_69 = arith.constant 0 : index
    %c0_70 = arith.constant 0 : index
    %153 = vector.load %arg10[%c0_69, %c0_70] : memref<1x32xf32, #tpu.memory_space<vmem>>, vector<1x32xf32>
    %cst_71 = arith.constant dense<0.000000e+00> : vector<8xf32>
    %154 = vector.multi_reduction <add>, %151, %cst_71 [1] : vector<8x32xf32> to vector<8xf32>
    %155 = vector.shape_cast %154 : vector<8xf32> to vector<8x1xf32>
    %cst_72 = arith.constant 3.200000e+01 : f32
    %156 = vector.broadcast %cst_72 : f32 to vector<8x1xf32>
    %157 = arith.divf %155, %156 : vector<8x1xf32>
    %158 = vector.broadcast %157 : vector<8x1xf32> to vector<8x32xf32>
    %159 = arith.subf %151, %158 : vector<8x32xf32>
    %160 = arith.mulf %159, %159 : vector<8x32xf32>
    %cst_73 = arith.constant dense<0.000000e+00> : vector<8xf32>
    %161 = vector.multi_reduction <add>, %160, %cst_73 [1] : vector<8x32xf32> to vector<8xf32>
    %162 = vector.shape_cast %161 : vector<8xf32> to vector<8x1xf32>
    %cst_74 = arith.constant 3.200000e+01 : f32
    %163 = vector.broadcast %cst_74 : f32 to vector<8x1xf32>
    %164 = arith.divf %162, %163 : vector<8x1xf32>
    %165 = vector.broadcast %157 : vector<8x1xf32> to vector<8x32xf32>
    %166 = arith.subf %151, %165 : vector<8x32xf32>
    %cst_75 = arith.constant 9.99999974E-6 : f32
    %167 = vector.broadcast %cst_75 : f32 to vector<8x1xf32>
    %168 = arith.addf %164, %167 : vector<8x1xf32>
    %169 = math.rsqrt %168 : vector<8x1xf32>
    %170 = vector.broadcast %169 : vector<8x1xf32> to vector<8x32xf32>
    %171 = arith.mulf %166, %170 : vector<8x32xf32>
    %172 = vector.broadcast %152 : vector<1x32xf32> to vector<8x32xf32>
    %173 = arith.mulf %171, %172 : vector<8x32xf32>
    %174 = vector.broadcast %153 : vector<1x32xf32> to vector<8x32xf32>
    %175 = arith.addf %173, %174 : vector<8x32xf32>
    %c0_76 = arith.constant 0 : index
    %c0_77 = arith.constant 0 : index
    %176 = vector.load %arg11[%c0_76, %c0_77] : memref<32x128xf32, #tpu.memory_space<vmem>>, vector<32x128xf32>
    %cst_78 = arith.constant dense<0.000000e+00> : vector<8x128xf32>
    %177 = tpu.matmul %175, %176, %cst_78 {dimension_numbers = #tpu.dot_dimension_numbers<[1], [0], [0], [1], [0, 0, 1, 1], [], []>} : vector<8x32xf32>, vector<32x128xf32>, vector<8x128xf32> -> vector<8x128xf32>
    %c0_79 = arith.constant 0 : index
    %c0_80 = arith.constant 0 : index
    %178 = vector.load %arg12[%c0_79, %c0_80] : memref<1x128xf32, #tpu.memory_space<vmem>>, vector<1x128xf32>
    %179 = vector.broadcast %178 : vector<1x128xf32> to vector<8x128xf32>
    %180 = arith.addf %177, %179 : vector<8x128xf32>
    %cst_81 = arith.constant 5.000000e-01 : f32
    %181 = vector.broadcast %cst_81 : f32 to vector<8x128xf32>
    %182 = arith.mulf %181, %180 : vector<8x128xf32>
    %cst_82 = arith.constant 0.707106769 : f32
    %183 = vector.broadcast %cst_82 : f32 to vector<8x128xf32>
    %184 = arith.mulf %180, %183 : vector<8x128xf32>
    %cst_83 = arith.constant 0.000000e+00 : f32
    %185 = vector.broadcast %cst_83 : f32 to vector<8x128xf32>
    %186 = arith.cmpf olt, %184, %185 : vector<8x128xf32>
    %cst_84 = arith.constant -1.000000e+00 : f32
    %cst_85 = arith.constant 1.000000e+00 : f32
    %187 = vector.broadcast %cst_84 : f32 to vector<8x128xf32>
    %188 = vector.broadcast %cst_85 : f32 to vector<8x128xf32>
    %189 = arith.select %186, %187, %188 : vector<8x128xi1>, vector<8x128xf32>
    %190 = math.absf %184 : vector<8x128xf32>
    %cst_86 = arith.constant 0.327591091 : f32
    %191 = vector.broadcast %cst_86 : f32 to vector<8x128xf32>
    %192 = arith.mulf %191, %190 : vector<8x128xf32>
    %cst_87 = arith.constant 1.000000e+00 : f32
    %193 = vector.broadcast %cst_87 : f32 to vector<8x128xf32>
    %194 = arith.addf %193, %192 : vector<8x128xf32>
    %cst_88 = arith.constant 1.000000e+00 : f32
    %195 = vector.broadcast %cst_88 : f32 to vector<8x128xf32>
    %196 = arith.divf %195, %194 : vector<8x128xf32>
    %cst_89 = arith.constant 1.06140542 : f32
    %197 = vector.broadcast %cst_89 : f32 to vector<8x128xf32>
    %198 = arith.mulf %197, %196 : vector<8x128xf32>
    %cst_90 = arith.constant -1.45315206 : f32
    %199 = vector.broadcast %cst_90 : f32 to vector<8x128xf32>
    %200 = arith.addf %198, %199 : vector<8x128xf32>
    %201 = arith.mulf %200, %196 : vector<8x128xf32>
    %cst_91 = arith.constant 1.42141378 : f32
    %202 = vector.broadcast %cst_91 : f32 to vector<8x128xf32>
    %203 = arith.addf %201, %202 : vector<8x128xf32>
    %204 = arith.mulf %203, %196 : vector<8x128xf32>
    %cst_92 = arith.constant -0.284496725 : f32
    %205 = vector.broadcast %cst_92 : f32 to vector<8x128xf32>
    %206 = arith.addf %204, %205 : vector<8x128xf32>
    %207 = arith.mulf %206, %196 : vector<8x128xf32>
    %cst_93 = arith.constant 0.254829586 : f32
    %208 = vector.broadcast %cst_93 : f32 to vector<8x128xf32>
    %209 = arith.addf %207, %208 : vector<8x128xf32>
    %210 = arith.mulf %209, %196 : vector<8x128xf32>
    %cst_94 = arith.constant 0.000000e+00 : f32
    %211 = vector.broadcast %cst_94 : f32 to vector<8x128xf32>
    %212 = arith.subf %211, %190 : vector<8x128xf32>
    %213 = arith.mulf %212, %190 : vector<8x128xf32>
    %214 = math.exp %213 : vector<8x128xf32>
    %215 = arith.mulf %210, %214 : vector<8x128xf32>
    %cst_95 = arith.constant 1.000000e+00 : f32
    %216 = vector.broadcast %cst_95 : f32 to vector<8x128xf32>
    %217 = arith.subf %216, %215 : vector<8x128xf32>
    %218 = arith.mulf %189, %217 : vector<8x128xf32>
    %cst_96 = arith.constant 1.000000e+00 : f32
    %219 = vector.broadcast %cst_96 : f32 to vector<8x128xf32>
    %220 = arith.addf %219, %218 : vector<8x128xf32>
    %221 = arith.mulf %182, %220 : vector<8x128xf32>
    %c0_97 = arith.constant 0 : index
    %c0_98 = arith.constant 0 : index
    %222 = vector.load %arg13[%c0_97, %c0_98] : memref<128x32xf32, #tpu.memory_space<vmem>>, vector<128x32xf32>
    %cst_99 = arith.constant dense<0.000000e+00> : vector<8x32xf32>
    %223 = tpu.matmul %221, %222, %cst_99 {dimension_numbers = #tpu.dot_dimension_numbers<[1], [0], [0], [1], [0, 0, 1, 1], [], []>} : vector<8x128xf32>, vector<128x32xf32>, vector<8x32xf32> -> vector<8x32xf32>
    %c0_100 = arith.constant 0 : index
    %c0_101 = arith.constant 0 : index
    %224 = vector.load %arg14[%c0_100, %c0_101] : memref<1x32xf32, #tpu.memory_space<vmem>>, vector<1x32xf32>
    %225 = vector.broadcast %224 : vector<1x32xf32> to vector<8x32xf32>
    %226 = arith.addf %223, %225 : vector<8x32xf32>
    %227 = arith.addf %151, %226 : vector<8x32xf32>
    %c0_102 = arith.constant 0 : index
    %c0_103 = arith.constant 0 : index
    %c0_104 = arith.constant 0 : index
    %228 = vector.load %arg15[%c0_102, %c0_103, %c0_104] : memref<1x8x32xf32, #tpu.memory_space<vmem>>, vector<1x8x32xf32>
    %229 = vector.shape_cast %228 : vector<1x8x32xf32> to vector<8x32xf32>
    %230 = vector.shape_cast %227 : vector<8x32xf32> to vector<1x8x32xf32>
    tpu.vector_store %arg15[%c0_102, %c0_103, %c0_104], %230 {strides = array<i32>} : memref<1x8x32xf32, #tpu.memory_space<vmem>>, vector<1x8x32xf32>,
    return
  }
  func.func @transform_0(%arg0: i32) -> (i32, i32, i32) {
    %c0_i32 = arith.constant 0 : i32
    %c0_i32_0 = arith.constant 0 : i32
    %c0_i32_1 = arith.constant 0 : i32
    return %arg0, %c0_i32, %c0_i32_0 : i32, i32, i32
  }
  func.func @transform_1(%arg0: i32) -> (i32, i32, i32) {
    %c0_i32 = arith.constant 0 : i32
    %c0_i32_0 = arith.constant 0 : i32
    %c0_i32_1 = arith.constant 0 : i32
    return %arg0, %c0_i32, %c0_i32_0 : i32, i32, i32
  }
  func.func @transform_2(%arg0: i32) -> (i32, i32) {
    %c0_i32 = arith.constant 0 : i32
    %c0_i32_0 = arith.constant 0 : i32
    %c0_i32_1 = arith.constant 0 : i32
    return %c0_i32, %c0_i32_0 : i32, i32
  }
  func.func @transform_3(%arg0: i32) -> (i32, i32) {
    %c0_i32 = arith.constant 0 : i32
    %c0_i32_0 = arith.constant 0 : i32
    %c0_i32_1 = arith.constant 0 : i32
    return %c0_i32, %c0_i32_0 : i32, i32
  }
  func.func @transform_4(%arg0: i32) -> (i32, i32) {
    %c0_i32 = arith.constant 0 : i32
    %c0_i32_0 = arith.constant 0 : i32
    %c0_i32_1 = arith.constant 0 : i32
    return %c0_i32, %c0_i32_0 : i32, i32
  }
  func.func @transform_5(%arg0: i32) -> (i32, i32) {
    %c0_i32 = arith.constant 0 : i32
    %c0_i32_0 = arith.constant 0 : i32
    %c0_i32_1 = arith.constant 0 : i32
    return %c0_i32, %c0_i32_0 : i32, i32
  }
  func.func @transform_6(%arg0: i32) -> (i32, i32) {
    %c0_i32 = arith.constant 0 : i32
    %c0_i32_0 = arith.constant 0 : i32
    %c0_i32_1 = arith.constant 0 : i32
    return %c0_i32, %c0_i32_0 : i32, i32
  }
  func.func @transform_7(%arg0: i32) -> (i32, i32) {
    %c0_i32 = arith.constant 0 : i32
    %c0_i32_0 = arith.constant 0 : i32
    %c0_i32_1 = arith.constant 0 : i32
    return %c0_i32, %c0_i32_0 : i32, i32
  }
  func.func @transform_8(%arg0: i32) -> (i32, i32) {
    %c0_i32 = arith.constant 0 : i32
    %c0_i32_0 = arith.constant 0 : i32
    %c0_i32_1 = arith.constant 0 : i32
    return %c0_i32, %c0_i32_0 : i32, i32
  }
  func.func @transform_9(%arg0: i32) -> (i32, i32) {
    %c0_i32 = arith.constant 0 : i32
    %c0_i32_0 = arith.constant 0 : i32
    %c0_i32_1 = arith.constant 0 : i32
    return %c0_i32, %c0_i32_0 : i32, i32
  }
  func.func @transform_10(%arg0: i32) -> (i32, i32) {
    %c0_i32 = arith.constant 0 : i32
    %c0_i32_0 = arith.constant 0 : i32
    %c0_i32_1 = arith.constant 0 : i32
    return %c0_i32, %c0_i32_0 : i32, i32
  }
  func.func @transform_11(%arg0: i32) -> (i32, i32) {
    %c0_i32 = arith.constant 0 : i32
    %c0_i32_0 = arith.constant 0 : i32
    %c0_i32_1 = arith.constant 0 : i32
    return %c0_i32, %c0_i32_0 : i32, i32
  }
  func.func @transform_12(%arg0: i32) -> (i32, i32) {
    %c0_i32 = arith.constant 0 : i32
    %c0_i32_0 = arith.constant 0 : i32
    %c0_i32_1 = arith.constant 0 : i32
    return %c0_i32, %c0_i32_0 : i32, i32
  }
  func.func @transform_13(%arg0: i32) -> (i32, i32) {
    %c0_i32 = arith.constant 0 : i32
    %c0_i32_0 = arith.constant 0 : i32
    %c0_i32_1 = arith.constant 0 : i32
    return %c0_i32, %c0_i32_0 : i32, i32
  }
  func.func @transform_14(%arg0: i32) -> (i32, i32, i32) {
    %c0_i32 = arith.constant 0 : i32
    %c0_i32_0 = arith.constant 0 : i32
    %c0_i32_1 = arith.constant 0 : i32
    return %arg0, %c0_i32, %c0_i32_0 : i32, i32, i32
  }
  func.func @transform_15(%arg0: i32) -> (i32, i32, i32, i32) {
    %c0_i32 = arith.constant 0 : i32
    %c0_i32_0 = arith.constant 0 : i32
    %c0_i32_1 = arith.constant 0 : i32
    %c0_i32_2 = arith.constant 0 : i32
    return %arg0, %c0_i32, %c0_i32_0, %c0_i32_1 : i32, i32, i32, i32
  }
}

</mosaic_0001>

<bundles_post_ra>
// kernel: tpu_custom_call.1
= control target key start
LH: loop header
LB: loop body
LE: loop exit
PB: predicated region body
PF: predicated region fallthrough
CT: control target
= control target key end

     0   :  { %s1941_s0 = inlined_call_operand.vmem [shape: f32[2,8,32], index: 0, kind: input, shape index: {}]   ;;  %s1942_s1 = inlined_call_operand.vmem [shape: f32[2,1,8], index: 1, kind: input, shape index: {}]   ;;  %s1943_s2 = inlined_call_operand.vmem [shape: f32[1,32], index: 2, kind: input, shape index: {}]   ;;  %s1944_s3 = inlined_call_operand.vmem [shape: f32[1,32], index: 3, kind: input, shape index: {}]   ;;  %s1945_s4 = inlined_call_operand.vmem [shape: f32[32,96], index: 4, kind: input, shape index: {}]   ;;  %s1946_s5 = inlined_call_operand.vmem [shape: f32[1,96], index: 5, kind: input, shape index: {}]   ;;  %s1947_s6 = inlined_call_operand.vmem [shape: f32[32,32], index: 6, kind: input, shape index: {}]   ;;  %s1948_s7 = inlined_call_operand.vmem [shape: f32[1,32], index: 7, kind: input, shape index: {}]   ;;  %s1949_s8 = inlined_call_operand.vmem [shape: f32[1,32], index: 8, kind: input, shape index: {}]   ;;  %s1950_s9 = inlined_call_operand.vmem [shape: f32[1,32], index: 9, kind: input, shape index: {}]   ;;  %s1951_s10 = inlined_call_operand.vmem [shape: f32[32,128], index: 10, kind: input, shape index: {}]   ;;  %s1952_s11 = inlined_call_operand.vmem [shape: f32[1,128], index: 11, kind: input, shape index: {}]   ;;  %s1953_s12 = inlined_call_operand.vmem [shape: f32[128,32], index: 12, kind: input, shape index: {}]   ;;  %s1954_s13 = inlined_call_operand.vmem [shape: f32[1,32], index: 13, kind: input, shape index: {}]   ;;  %s1955_s14 = inlined_call_operand.hbm [shape: f32[2,8,32], index: 14, kind: output, shape index: {0}]   ;;  %s1956_s15 = inlined_call_operand.hbm [shape: f32[2,4,8,8], index: 15, kind: output, shape index: {1}]  }
   0x1   :  { %1958 = sst [smem:[#allocation10_spill]] %s1941_s0 }
   0x2   :  { %1959 = sst [smem:[#allocation11_spill]] %s1942_s1 }
   0x3   :  { %1960 = sst [smem:[#allocation12_spill]] %s1943_s2 }
   0x4   :  { %1961 = sst [smem:[#allocation13_spill]] %s1944_s3 }
   0x5   :  { %1962 = sst [smem:[#allocation14_spill]] %s1945_s4 }
   0x6   :  { %1963 = sst [smem:[#allocation15_spill]] %s1946_s5 }
   0x7   :  { %1964 = sst [smem:[#allocation16_spill]] %s1947_s6 }
   0x8   :  { %1965 = sst [smem:[#allocation17_spill]] %s1948_s7 }
   0x9   :  { %21 = vsyncpa [#allocation3], 0 }
   0xa   :  { %23 = vsyncpa [#allocation3 + $0x1], 0 }
   0xb   :  { %24 = vsyncpa [#allocation5], 0 }
   0xc   :  { %26 = vsyncpa [#allocation5 + $0x1], 0  ;;  %s1629_s18 = smov 0   ;;  %s1631_s19 = smov 0  }
   0xd   :  { %s1633_s20 = smov 0   ;;  %s1635_s21 = smov 0  }
   0xe LB: > { %1966 = sst [smem:[#allocation8_spill]] %s1527_s20  ;;  %s1650_s22 = sadd.s32 4294967295, %s1531_s21   ;;  %s1531_s21 = sphi %s1635_s21, %s1984_s21   ;;  %s1527_s20 = sphi %s1633_s20, %s1981_s20   ;;  %s1523_s19 = sphi %s1631_s19, %s1983_s19   ;;  %s1519_s18 = sphi %s1629_s18, %s1982_s18  }
   0xf   : > { %s1307_s23 = sadd.s32 4294967294, %s1531_s21   ;;  %s1654_s24 = sadd.s32 1, %s1531_s21  }
  0x10   : > { %s343_s25 = sadd.s32 1, %s1527_s20  ;;  %s340_s26 = ssub.s32 %s1531_s21, %s1654_s24 }
  0x11   : > { %p353_p0 = scmp.ne.s32.totalorder %s1527_s20, %s1523_s19  ;;  %p341_p1 = scmp.eq.s32.totalorder %s340_s26, 0 }
  0x12   : > { %p354_p2 = scmp.eq.s32.totalorder %s1650_s22, 1  ;;  %p359_p3 = scmp.ne.s32.totalorder %s1523_s19, %s1519_s18 }
  0x13   : > { %p360_p4 = scmp.eq.s32.totalorder %s1307_s23, 1  ;;  %p1310_p7 = scmp.ge.s32.totalorder %s1531_s21, 1 }
  0x14   : > { %s1665_s27 = scalar_select %p341_p1, %s1527_s20, %s343_s25  }
  0x15   : > { %p1667_p5 = por %p354_p2, %p353_p0  ;;  %p1671_p6 = por %p360_p4, %p359_p3 }
  0x16   : > { %1967 = sst [smem:[#allocation9_spill]] %s1665_s27  ;;  %p453_p8 = scmp.lt.s32.totalorder %s1531_s21, 3 }
  0x18   : > { %p454_p9 = pnand %p1310_p7, %p453_p8 }
  0x19   : > { %p508_p10 = scmp.lt.s32.totalorder (!%p454_p9), %s1650_s22, 1  ;;  %s1970_s0 = sld [smem:[#allocation10_spill]] (!%p454_p9) }
  0x1a   : > { %457 = sbr.rel (%p454_p9) target bundleno = 2219 (0x8ab), region = 76  ;;  %s1971_s4 = sld [smem:[#allocation14_spill]] (!%p454_p9) }
  0x1b   : > { %s1972_s2 = sld [smem:[#allocation12_spill]] (!%p454_p9)  ;;  %s1534_s23 = smov (!%p454_p9), 112  }
  0x1c   : > { %s1973_s3 = sld [smem:[#allocation13_spill]] (!%p454_p9)  ;;  %s1537_s26 = smov (!%p454_p9), 80  }
  0x1d   : > { %s1974_s5 = sld [smem:[#allocation15_spill]] (!%p454_p9)  ;;  %s1538_s20 = smov (!%p454_p9), 88  }
  0x1e   : > { %s1975_s1 = sld [smem:[#allocation11_spill]] (!%p454_p9)  ;;  %s1764_s27 = sand.u32 (!%p454_p9), 1, %s1523_s19  }
  0x1f   : > { %s1679_s30 = scalar_select %p508_p10, %s1650_s22, 1  ;;  %vm518_vm0 = vcmask 261120   ;;  %v1533_v2 = vmov 32.0   ;;  %vm595_vm5 = vcmask 64512   ;;  %v1539_v42 = vmov 0  }
  0x20   : > { %1411 = vrcp.f32 %v1533_v2  ;;  %v559_v14 = vld [vmem:[%s1971_s4 + $0x18] sm:$0xff]  ;;  %v558_v15 = vld [vmem:[%s1971_s4 + $0x10] sm:$0xff]  ;;  %v557_v16 = vld [vmem:[%s1971_s4 + $0x8] sm:$0xff]  ;;  %s1978_s6 = sld [smem:[#allocation16_spill]] }
  0x21   : > { %s1313_s16 = sshll.u32 %s1679_s30, 3  ;;  %579 = vmatpush.msra.mxu0 %v559_v14  ;;  %v556_v17 = vld [vmem:[%s1971_s4] sm:$0xff]  ;;  %s1979_s7 = sld [smem:[#allocation17_spill]] }
  0x22   : > { %s511_s25 = scalar_lea.vmem %s1970_s0, %s1313_s16  ;;  %v1403_v27 = vld [vmem:[%s1972_s2] ss:$0 sm:$0xff]  ;;  %s1536_s0 = smov 96  }
  0x23   : > { %v1685_v0 = vld [vmem:[%s511_s25] sm:$0xff]  ;;  %580 = vmatpush.msra.mxu0 %v558_v15  ;;  %s1535_s25 = smov 120   ;;  %s1312_s16 = sshll.u32 %s1764_s27, 5 }
  0x24   : > { %v519_v1 = vsel %vm518_vm0, %v1685_v0, 0.0  ;;  %v1404_v30 = vld [vmem:[%s1973_s3] ss:$0 sm:$0xff]  ;;  %s514_s17 = scalar_lea.vmem %s1975_s1, %s1679_s30  ;;  %s1540_s30 = smov 64  }
  0x25   : > { %520 = vadd.xlane.f32.xlu0 %v519_v1  ;;  %581 = vmatpush.msra.mxu0 %v557_v16  ;;  %v1405_v33 = vld [vmem:[%s1974_s5] ss:$0 sm:$0xff] }
  0x26   : > { %v1412_v3 = vpop.eup %1411  ;;  %v587_v41 = vld [vmem:[%s514_s17] sm:$0x1]  ;;  %s1768_s17 = scalar_lea.vmem [#allocation4], %s1312_s16  ;;  %s1174_s16 = scalar_lea.sflag [#allocation5], %s1764_s27 }
  0x27   : > { %v523_v4 = vmul.f32 32.0, %v1412_v3  ;;  %vm527_vm1 = vweird.f32 %v1412_v3  ;;  %582 = vmatpush.msra.mxu0 %v556_v17  ;;  %vm621_vm6 = vcmp.gt.f32.partialorder %v587_v41, 0.0 }
  0x28   : > { %v622_v43 = vsel %vm621_vm6, 1, %v1539_v42 }
  0x29   : > { %v524_v5 = vsub.f32 1.0, %v523_v4  ;;  %v623_v44 = vperm.slane %v622_v43, 0 }
  0x2b   : > { %v525_v6 = vmul.f32 %v1412_v3, %v524_v5  ;;  %vm1735_vm7 = vcmp.eq.s32.totalorder %v623_v44, 1 }
  0x2d   : > { %v526_v7 = vadd.f32 %v1412_v3, %v525_v6 }
  0x2f   : > { %v1689_v8 = vsel %vm527_vm1, %v1412_v3, %v526_v7 }
  0x98   : > { %v521_v9 = vpop.xlane.xlu0 %520 }
  0x99   : > { %v529_v10 = vmul.f32 %v1689_v8, %v521_v9 }
  0x9b   : > { %v530_v11 = vsub.f32 %v1685_v0, %v529_v10 }
  0x9d   : > { %v531_v12 = vmul.f32 %v530_v11, %v530_v11 }
  0x9f   : > { %v532_v13 = vsel %vm518_vm0, %v531_v12, 0.0 }
  0xa0   : > { %533 = vadd.xlane.f32.xlu0 %v532_v13 }
 0x113   : > { %v534_v18 = vpop.xlane.xlu0 %533 }
 0x114   : > { %v535_v19 = vmul.f32 %v534_v18, %v1689_v8 }
 0x116   : > { %v536_v20 = vadd.f32 1e-05, %v535_v19 }
 0x118   : > { %1413 = vrsqrt.f32 %v536_v20  ;;  %vm543_vm3 = vweird.f32 %v536_v20 }
 0x11e   : > { %v1414_v21 = vpop.eup %1413 }
 0x11f   : > { %v538_v22 = vmul.f32 %v1414_v21, %v536_v20  ;;  %vm544_vm2 = vweird.f32 %v1414_v21 }
 0x120   : > { %vm545_vm4 = vmor %vm543_vm3, %vm544_vm2 }
 0x121   : > { %v539_v23 = vmul.f32 %v1414_v21, %v538_v22 }
 0x123   : > { %v540_v24 = vmul.f32 0.5, %v539_v23 }
 0x125   : > { %v541_v25 = vsub.f32 1.5, %v540_v24 }
 0x127   : > { %v542_v26 = vmul.f32 %v1414_v21, %v541_v25 }
 0x129   : > { %v546_v28 = vsel %vm545_vm4, %v1414_v21, %v542_v26 }
 0x12a   : > { %v547_v29 = vmul.f32 %v546_v28, %v530_v11 }
 0x12c   : > { %v551_v31 = vmul.f32 %v1403_v27, %v547_v29 }
 0x12e   : > { %v555_v32 = vadd.f32 %v1404_v30, %v551_v31 }
 0x130   : > { %1314 = vmatmul.msk.f32.vlgmr.msra.gmra.mxu0 %vm518_vm0, %v555_v32 }
 0x1ad   : > { %v584_v34 = vpop.f32.mrf.mxu0 }
 0x1ae   : > { %v1717_v35 = vadd.f32 %v1405_v33, %v584_v34 }
 0x1b0   : > { %805 = vrot.lane.b32.xlu0 %v1717_v35, %s1534_s23  ;;  %677 = vrot.lane.b32.xlu2 %v1717_v35, %s1535_s25  ;;  %s1541_s23 = smov 56   ;;  %s1542_s25 = smov 48  }
 0x1b1   : > { %593 = vrot.lane.b32.xlu1 %v1717_v35, %s1536_s0  ;;  %s1543_s0 = smov 72  }
 0x1b8   : > { %807 = vrot.lane.b32.xlu2 %v1717_v35, %s1537_s26  ;;  %s1544_s26 = smov 104  }
 0x1b9   : > { %679 = vrot.lane.b32.xlu1 %v1717_v35, %s1538_s20  ;;  %s1545_s20 = smov 40  }
 0x20a   : > { %v678_v36 = vpop.permute.xlu2 %677 }
 0x212   : > { %v808_v39 = vpop.permute.xlu2 %807 }
 0x222   : > { %v806_v40 = vpop.permute.xlu0 %805 }
 0x223   : > { %v594_v37 = vpop.permute.xlu1 %593 }
 0x224   : > { %1315 = vmatpush.xpose.msk.msra.mxu1 %vm595_vm5, %v594_v37 }
 0x227   : > { %1316 = vmatmul.msk.f32.vlgmr.msra.gmra.mxu1 %vm595_vm5, %v1717_v35 }
 0x22b   : > { %v680_v38 = vpop.permute.xlu1 %679 }
 0x22c   : > { %1318 = vmatpush.xpose.msk.msrb.mxu0 %vm595_vm5, %v680_v38 }
 0x22f   : > { %1319 = vmatmul.msk.f32.vlgmr.msrb.gmra.mxu0 %vm595_vm5, %v678_v36 }
 0x230   : > { %1324 = vmatpush.xpose.msk.msra.mxu0 %vm595_vm5, %v808_v39 }
 0x237   : > { %1325 = vmatmul.msk.f32.vlgmr.msra.gmra.mxu0 %vm595_vm5, %v806_v40 }
 0x2a4   : > { %v617_v45 = vpop.f32.mrf.mxu1 }
 0x2a5   : > { %v620_v47 = vmul.f32 0.35355338, %v617_v45 }
 0x2a7   : > { %v625_v48 = vsel %vm1735_vm7, %v620_v47, -inf }
 0x2a8   : > { %v626_v49 = vsel %vm595_vm5, %v625_v48, -inf }
 0x2a9   : > { %627 = vmax.xlane.f32.xlu1 %v626_v49 }
 0x2ac   : > { %v702_v50 = vpop.f32.mrf.mxu0 }
 0x2ad   : > { %v705_v51 = vmul.f32 0.35355338, %v702_v50 }
 0x2af   : > { %v706_v52 = vsel %vm1735_vm7, %v705_v51, -inf }
 0x2b0   : > { %v707_v53 = vsel %vm595_vm5, %v706_v52, -inf }
 0x2b1   : > { %708 = vmax.xlane.f32.xlu2 %v707_v53 }
 0x2b4   : > { %v830_v54 = vpop.f32.mrf.mxu0 }
 0x2b5   : > { %v833_v55 = vmul.f32 0.35355338, %v830_v54  ;;  %v588_v54 = vld [vmem:[%s1978_s6] sm:$0xff] }
 0x2b6   : > { %800 = vmatpush.msra.mxu3 %v588_v54  ;;  %v1141_v54 = vld [vmem:[%s1953_s12 + $0x78] sm:$0xff] }
 0x2b7   : > { %v834_v56 = vsel %vm1735_vm7, %v833_v55, -inf  ;;  %v589_v55 = vld [vmem:[%s1978_s6 + $0x8] sm:$0xff] }
 0x2b8   : > { %v835_v57 = vsel %vm595_vm5, %v834_v56, -inf  ;;  %777 = vmatpush.msrb.mxu1 %v589_v55  ;;  %v1140_v55 = vld [vmem:[%s1953_s12 + $0x70] sm:$0xff]  ;;  %1146 = vmatpush.msrb.mxu3 %v1141_v54 }
 0x2b9   : > { %836 = vmax.xlane.f32.xlu0 %v835_v57 }
 0x2ba   : > { %1147 = vmatpush.msrb.mxu3 %v1140_v55 }
 0x2c2   : > { %651 = vrot.lane.b32.xlu1 %v1717_v35, %s1540_s30 }
 0x2c9   : > { %733 = vrot.lane.b32.xlu2 %v1717_v35, %s1541_s23 }
 0x2cd   : > { %861 = vrot.lane.b32.xlu0 %v1717_v35, %s1542_s25 }
 0x31c   : > { %v628_v58 = vpop.xlane.xlu1 %627 }
 0x31d   : > { %v629_v59 = vsub.f32 %v625_v48, %v628_v58 }
 0x31f   : > { %v630_v60 = vmul.f32 1.442695, %v629_v59 }
 0x321   : > { %1415 = vpow2.f32 %v630_v60 }
 0x324   : > { %v709_v61 = vpop.xlane.xlu2 %708 }
 0x325   : > { %v710_v62 = vsub.f32 %v706_v52, %v709_v61 }
 0x327   : > { %v1416_v63 = vpop.eup %1415  ;;  %v711_v1 = vmul.f32 1.442695, %v710_v62 }
 0x328   : > { %v632_v2 = vsel %vm595_vm5, %v1416_v63, 0.0 }
 0x329   : > { %1417 = vpow2.f32 %v711_v1  ;;  %633 = vadd.xlane.f32.xlu2 %v632_v2 }
 0x32c   : > { %v837_v3 = vpop.xlane.xlu0 %836  ;;  %v734_v10 = vpop.permute.xlu2 %733 }
 0x32d   : > { %v838_v4 = vsub.f32 %v834_v56, %v837_v3  ;;  %v590_v56 = vld [vmem:[%s1978_s6 + $0x10] sm:$0xff] }
 0x32e   : > { %905 = vmatpush.msra.mxu1 %v590_v56  ;;  %v1139_v56 = vld [vmem:[%s1953_s12 + $0x68] sm:$0xff] }
 0x32f   : > { %v1752_v5 = vpop.eup %1417  ;;  %v839_v6 = vmul.f32 1.442695, %v838_v4  ;;  %1148 = vmatpush.msrb.mxu3 %v1139_v56 }
 0x330   : > { %v713_v7 = vsel %vm595_vm5, %v1752_v5, 0.0 }
 0x331   : > { %1419 = vpow2.f32 %v839_v6  ;;  %714 = vadd.xlane.f32.xlu1 %v713_v7  ;;  %v591_v6 = vld [vmem:[%s1978_s6 + $0x18] sm:$0xff] }
 0x334   : > { %v652_v9 = vpop.permute.xlu1 %651 }
 0x335   : > { %672 = vmatpush.msra.mxu2 %v652_v9 }
 0x337   : > { %754 = vmatpush.msrb.mxu2 %v734_v10  ;;  %v1756_v11 = vpop.eup %1419 }
 0x338   : > { %v841_v12 = vsel %vm595_vm5, %v1756_v11, 0.0 }
 0x339   : > { %842 = vadd.xlane.f32.xlu2 %v841_v12 }
 0x33f   : > { %v862_v33 = vpop.permute.xlu0 %861 }
 0x34a   : > { %913 = vrot.lane.b32.xlu1 %v1717_v35, %s1543_s0  ;;  %s1200_s0 = sshll.u32 %s1768_s17, 4  ;;  %s1201_s0 = int_to_ptr.vmem [resolvable:$true] %s1200_s0 }
 0x351   : > { %911 = vrot.lane.b32.xlu2 %v1717_v35, %s1544_s26  ;;  %s1342_s26 = sshll.u32 %s1650_s22, 5 }
 0x352   : > { %s1199_s3 = scalar_lea.hbm %s1956_s15, %s1342_s26 }
 0x359   : > { %967 = vrot.lane.b32.xlu2 %v1717_v35, %s1545_s20  ;;  %s1202_s20 = sshll.u32 %s1199_s3, 4  ;;  %s1203_s20 = int_to_ptr.hbm [resolvable:$true] %s1202_s20 }
 0x35a   : > { %s1451_s30 = sshra.s32 %s1203_s20, 4  ;;  %s1452_s30 = int_to_ptr.hbm [resolvable:$true] %s1451_s30 }
 0x35b   : > { %s1453_s23 = scalar_lea.hbm %s1452_s30, 32  ;;  %p1458_p0 = scmp.lt.s32.totalorder %s1452_s30, %s1956_s15 }
 0x35c   : > { %p1454_p11 = scmp.ne.s32.totalorder %s1452_s30, %s1453_s23 }
 0x35e   : > { %p1455_p12 = pnand %p1454_p11, %p1667_p5 }
 0x360   : > { %p1456_p13 = pneg %p1455_p12 }
 0x39c   : > { %v634_v13 = vpop.xlane.xlu2 %633 }
 0x39d   : > { %1421 = vrcp.f32 %v634_v13  ;;  %v646_v19 = vand.u32 2147483648, %v634_v13  ;;  %v644_v20 = vand.u32 2147483647, %v634_v13  ;;  %vm640_vm9 = vweird.f32 %v634_v13 }
 0x39f   : > { %v647_v23 = vor.u32 1.1754944e-38, %v646_v19  ;;  %vm645_vm11 = vcmp.eq.f32.partialorder %v644_v20, 8.507059e+37 }
 0x3a3   : > { %v1422_v14 = vpop.eup %1421 }
 0x3a4   : > { %v636_v15 = vmul.f32 %v1422_v14, %v634_v13  ;;  %v715_v16 = vpop.xlane.xlu1 %714  ;;  %vm641_vm8 = vweird.f32 %v1422_v14 }
 0x3a5   : > { %1423 = vrcp.f32 %v715_v16  ;;  %vm642_vm10 = vmor %vm640_vm9, %vm641_vm8  ;;  %v727_v29 = vand.u32 2147483648, %v715_v16  ;;  %v725_v32 = vand.u32 2147483647, %v715_v16  ;;  %vm721_vm13 = vweird.f32 %v715_v16 }
 0x3a6   : > { %v637_v17 = vsub.f32 1.0, %v636_v15 }
 0x3a7   : > { %v728_v36 = vor.u32 1.1754944e-38, %v727_v29  ;;  %vm726_vm15 = vcmp.eq.f32.partialorder %v725_v32, 8.507059e+37 }
 0x3a8   : > { %v638_v18 = vmul.f32 %v1422_v14, %v637_v17 }
 0x3aa   : > { %v639_v21 = vadd.f32 %v1422_v14, %v638_v18 }
 0x3ab   : > { %v1424_v22 = vpop.eup %1423 }
 0x3ac   : > { %v717_v24 = vmul.f32 %v1424_v22, %v715_v16  ;;  %v843_v25 = vpop.xlane.xlu2 %842  ;;  %v643_v26 = vsel %vm642_vm10, %v1422_v14, %v639_v21  ;;  %vm722_vm12 = vweird.f32 %v1424_v22 }
 0x3ad   : > { %1425 = vrcp.f32 %v843_v25  ;;  %v648_v28 = vsel %vm645_vm11, %v647_v23, %v643_v26  ;;  %vm723_vm14 = vmor %vm721_vm13, %vm722_vm12  ;;  %v855_v43 = vand.u32 2147483648, %v843_v25  ;;  %v853_v45 = vand.u32 2147483647, %v843_v25 }
 0x3ae   : > { %v718_v27 = vsub.f32 1.0, %v717_v24  ;;  %v649_v30 = vmul.f32 %v1416_v63, %v648_v28  ;;  %vm849_vm2 = vweird.f32 %v843_v25 }
 0x3af   : > { %v856_v48 = vor.u32 1.1754944e-38, %v855_v43  ;;  %vm854_vm4 = vcmp.eq.f32.partialorder %v853_v45, 8.507059e+37 }
 0x3b0   : > { %v719_v31 = vmul.f32 %v1424_v22, %v718_v27  ;;  %1317 = vmatmul.msk.f32.vlgmr.msra.gmra.mxu2 %vm595_vm5, %v649_v30  ;;  %650 = vst.msk [vmem:[%s1768_s17] sm:$0xff] %vm595_vm5, %v649_v30  ;;  %v1406_v27 = vld [vmem:[%s1979_s7] ss:$0 sm:$0xff] }
 0x3b1   : > { %882 = vmatpush.msra.mxu2 %v862_v33 }
 0x3b2   : > { %v720_v34 = vadd.f32 %v1424_v22, %v719_v31 }
 0x3b3   : > { %v1426_v35 = vpop.eup %1425 }
 0x3b4   : > { %v845_v37 = vmul.f32 %v1426_v35, %v843_v25  ;;  %v912_v38 = vpop.permute.xlu2 %911  ;;  %v724_v39 = vsel %vm723_vm14, %v1424_v22, %v720_v34  ;;  %vm850_vm1 = vweird.f32 %v1426_v35 }
 0x3b5   : > { %v729_v40 = vsel %vm726_vm15, %v728_v36, %v724_v39  ;;  %vm851_vm3 = vmor %vm849_vm2, %vm850_vm1  ;;  %v1058_v36 = vld [vmem:[%s1951_s10 + $0x18] sm:$0xff] }
 0x3b6   : > { %v846_v41 = vsub.f32 1.0, %v845_v37  ;;  %v730_v42 = vmul.f32 %v1752_v5, %v729_v40  ;;  %v1056_v37 = vld [vmem:[%s1951_s10 + $0x8] sm:$0xff] }
 0x3b8   : > { %v847_v44 = vmul.f32 %v1426_v35, %v846_v41  ;;  %1320 = vst.msk [vmem:[%s1768_s17 + $0x8] sm:$0xff] %vm595_vm5, %v730_v42  ;;  %1321 = vmatmul.msk.f32.vlgmr.msrb.gmra.mxu2 %vm595_vm5, %v730_v42 }
 0x3ba   : > { %v848_v47 = vadd.f32 %v1426_v35, %v847_v44 }
 0x3bc   : > { %v852_v49 = vsel %vm851_vm3, %v1426_v35, %v848_v47  ;;  %v968_v50 = vpop.permute.xlu2 %967  ;;  %v914_v51 = vpop.permute.xlu1 %913 }
 0x3bd   : > { %v857_v52 = vsel %vm854_vm4, %v856_v48, %v852_v49  ;;  %1329 = vmatpush.xpose.msk.msrb.mxu2 %vm595_vm5, %v914_v51  ;;  %988 = vmatpush.msrb.mxu0 %v968_v50  ;;  %v1407_v49 = vld [vmem:[%s1949_s8] ss:$0 sm:$0xff] }
 0x3be   : > { %v858_v53 = vmul.f32 %v1756_v11, %v857_v52 }
 0x3c0   : > { %1326 = vst.msk [vmem:[%s1768_s17 + $0x10] sm:$0xff] %vm595_vm5, %v858_v53  ;;  %1327 = vmatmul.msk.f32.vlgmr.msra.gmra.mxu2 %vm595_vm5, %v858_v53 }
 0x3c1   : > { %1011 = vmatpush.msra.mxu2 %v591_v6 }
 0x3c8   : > { %1330 = vmatmul.msk.f32.vlgmr.msrb.gmra.mxu2 %vm595_vm5, %v912_v38  ;;  %v1055_v38 = vld [vmem:[%s1951_s10] sm:$0xff] }
 0x433   : > { %v674_v57 = vpop.f32.mrf.mxu2 }
 0x434   : > { %1323 = vmatmul.msk.f32.vlgmr.msra.gmra.mxu3 %vm595_vm5, %v674_v57  ;;  %v1138_v57 = vld [vmem:[%s1953_s12 + $0x60] sm:$0xff] }
 0x435   : > { %1149 = vmatpush.msrb.mxu3 %v1138_v57 }
 0x43b   : > { %v756_v58 = vpop.f32.mrf.mxu2 }
 0x43c   : > { %1322 = vmatmul.msk.f32.vlgmr.msrb.gmra.mxu1 %vm595_vm5, %v756_v58  ;;  %v1137_v58 = vld [vmem:[%s1953_s12 + $0x58] sm:$0xff] }
 0x43d   : > { %1078 = vmatpush.msrb.mxu1 %v1058_v36  ;;  %1150 = vmatpush.msrb.mxu3 %v1137_v58 }
 0x443   : > { %v884_v59 = vpop.f32.mrf.mxu2 }
 0x444   : > { %1328 = vmatmul.msk.f32.vlgmr.msra.gmra.mxu1 %vm595_vm5, %v884_v59  ;;  %v1409_v59 = vld [vmem:[%s1952_s11] ss:$0 sm:$0xff] }
 0x44b   : > { %v936_v60 = vpop.f32.mrf.mxu2 }
 0x44c   : > { %v939_v61 = vmul.f32 0.35355338, %v936_v60  ;;  %v1136_v60 = vld [vmem:[%s1953_s12 + $0x50] sm:$0xff] }
 0x44d   : > { %1151 = vmatpush.msrb.mxu3 %v1136_v60 }
 0x44e   : > { %v940_v62 = vsel %vm1735_vm7, %v939_v61, -inf }
 0x44f   : > { %v941_v63 = vsel %vm595_vm5, %v940_v62, -inf }
 0x450   : > { %942 = vmax.xlane.f32.xlu0 %v941_v63 }
 0x4b7   : > { %v802_v21 = vpop.f32.mrf.mxu3 }
 0x4b9   : > { %v779_v20 = vpop.f32.mrf.mxu1 }
 0x4ba   : > { %v803_v23 = vadd.f32 %v802_v21, %v779_v20 }
 0x4c1   : > { %v907_v22 = vpop.f32.mrf.mxu1 }
 0x4c2   : > { %v910_v24 = vadd.f32 %v907_v22, %v803_v23 }
 0x4c3   : > { %v943_v1 = vpop.xlane.xlu0 %942 }
 0x4c4   : > { %v944_v2 = vsub.f32 %v940_v62, %v943_v1  ;;  %v1135_v62 = vld [vmem:[%s1953_s12 + $0x48] sm:$0xff]  ;;  %v1134_v1 = vld [vmem:[%s1953_s12 + $0x40] sm:$0xff] }
 0x4c5   : > { %1152 = vmatpush.msrb.mxu3 %v1135_v62 }
 0x4c6   : > { %v945_v3 = vmul.f32 1.442695, %v944_v2 }
 0x4c7   : > { %1153 = vmatpush.msrb.mxu3 %v1134_v1 }
 0x4c8   : > { %1427 = vpow2.f32 %v945_v3  ;;  %v1133_v3 = vld [vmem:[%s1953_s12 + $0x38] sm:$0xff] }
 0x4c9   : > { %1154 = vmatpush.msrb.mxu3 %v1133_v3 }
 0x4ce   : > { %v1428_v4 = vpop.eup %1427 }
 0x4cf   : > { %v947_v5 = vsel %vm595_vm5, %v1428_v4, 0.0 }
 0x4d0   : > { %948 = vadd.xlane.f32.xlu1 %v947_v5  ;;  %v1132_v5 = vld [vmem:[%s1953_s12 + $0x30] sm:$0xff] }
 0x4d1   : > { %1155 = vmatpush.msrb.mxu3 %v1132_v5 }
 0x543   : > { %v949_v7 = vpop.xlane.xlu1 %948 }
 0x544   : > { %1429 = vrcp.f32 %v949_v7  ;;  %v961_v11 = vand.u32 2147483648, %v949_v7  ;;  %v959_v13 = vand.u32 2147483647, %v949_v7  ;;  %vm955_vm7 = vweird.f32 %v949_v7 }
 0x546   : > { %v962_v15 = vor.u32 1.1754944e-38, %v961_v11  ;;  %vm960_vm9 = vcmp.eq.f32.partialorder %v959_v13, 8.507059e+37  ;;  %v1128_v11 = vld [vmem:[%s1953_s12 + $0x10] sm:$0xff] }
 0x54a   : > { %v1430_v46 = vpop.eup %1429 }
 0x54b   : > { %v951_v9 = vmul.f32 %v1430_v46, %v949_v7  ;;  %vm956_vm6 = vweird.f32 %v1430_v46  ;;  %v1131_v7 = vld [vmem:[%s1953_s12 + $0x28] sm:$0xff] }
 0x54c   : > { %vm957_vm8 = vmor %vm955_vm7, %vm956_vm6  ;;  %1156 = vmatpush.msrb.mxu3 %v1131_v7 }
 0x54d   : > { %v952_v10 = vsub.f32 1.0, %v951_v9  ;;  %v1130_v9 = vld [vmem:[%s1953_s12 + $0x20] sm:$0xff] }
 0x54e   : > { %1157 = vmatpush.msrb.mxu3 %v1130_v9 }
 0x54f   : > { %v953_v12 = vmul.f32 %v1430_v46, %v952_v10  ;;  %v1129_v10 = vld [vmem:[%s1953_s12 + $0x18] sm:$0xff] }
 0x550   : > { %1158 = vmatpush.msrb.mxu3 %v1129_v10 }
 0x551   : > { %v954_v14 = vadd.f32 %v1430_v46, %v953_v12  ;;  %v1127_v12 = vld [vmem:[%s1953_s12 + $0x8] sm:$0xff] }
 0x552   : > { %1159 = vmatpush.msrb.mxu3 %v1128_v11 }
 0x553   : > { %v958_v16 = vsel %vm957_vm8, %v1430_v46, %v954_v14 }
 0x554   : > { %v963_v17 = vsel %vm960_vm9, %v962_v15, %v958_v16  ;;  %v1126_v15 = vld [vmem:[%s1953_s12] sm:$0xff]  ;;  %1160 = vmatpush.msrb.mxu3 %v1127_v12 }
 0x555   : > { %v964_v18 = vmul.f32 %v1428_v4, %v963_v17 }
 0x556   : > { %1161 = vmatpush.msrb.mxu3 %v1126_v15 }
 0x557   : > { %1332 = vmatmul.msk.f32.vlgmr.msrb.gmra.mxu0 %vm595_vm5, %v964_v18  ;;  %1331 = vst.msk [vmem:[%s1768_s17 + $0x18] sm:$0xff] %vm595_vm5, %v964_v18  ;;  %s1457_s17 = scalar_lea.hbm %s1956_s15, 64 }
 0x558   : > { %p1459_p1 = scmp.lt.s32.totalorder %s1457_s17, %s1453_s23 }
 0x55a   : > { %p1460_p2 = por %p1459_p1, %p1458_p0 }
 0x55c   : > { %p1461_p3 = pnand %p1460_p2, %p1456_p13 }
 0x5d4   : > { %v990_v19 = vpop.f32.mrf.mxu0 }
 0x5d5   : > { %1333 = vmatmul.msk.f32.vlgmr.msra.gmra.mxu2 %vm595_vm5, %v990_v19 }
 0x658   : > { %v1013_v25 = vpop.f32.mrf.mxu2 }
 0x659   : > { %v1016_v26 = vadd.f32 %v1013_v25, %v910_v24 }
 0x65b   : > { %v1017_v28 = vadd.f32 %v1016_v26, %v1685_v0  ;;  %v1057_v0 = vld [vmem:[%s1951_s10 + $0x10] sm:$0xff] }
 0x65c   : > { %1079 = vmatpush.msrb.mxu1 %v1057_v0 }
 0x65d   : > { %v1809_v29 = vadd.f32 %v1406_v27, %v1017_v28 }
 0x65e   : > { %1080 = vmatpush.msrb.mxu1 %v1056_v37 }
 0x65f   : > { %v1025_v30 = vsel %vm518_vm0, %v1809_v29, 0.0 }
 0x660   : > { %1026 = vadd.xlane.f32.xlu2 %v1025_v30  ;;  %1081 = vmatpush.msrb.mxu1 %v1055_v38 }
 0x6d3   : > { %v1027_v31 = vpop.xlane.xlu2 %1026 }
 0x6d4   : > { %v1028_v32 = vmul.f32 %v1027_v31, %v1689_v8 }
 0x6d6   : > { %v1029_v33 = vsub.f32 %v1809_v29, %v1028_v32 }
 0x6d8   : > { %v1030_v34 = vmul.f32 %v1029_v33, %v1029_v33 }
 0x6da   : > { %v1031_v35 = vsel %vm518_vm0, %v1030_v34, 0.0 }
 0x6db   : > { %1032 = vadd.xlane.f32.xlu0 %v1031_v35 }
 0x74e   : > { %v1033_v39 = vpop.xlane.xlu0 %1032 }
 0x74f   : > { %v1034_v40 = vmul.f32 %v1033_v39, %v1689_v8  ;;  %v1408_v8 = vld [vmem:[%s1950_s9] ss:$0 sm:$0xff]  ;;  %v1546_v39 = vmov 1.0  }
 0x751   : > { %v1035_v41 = vadd.f32 1e-05, %v1034_v40 }
 0x753   : > { %1431 = vrsqrt.f32 %v1035_v41  ;;  %vm1042_vm10 = vweird.f32 %v1035_v41 }
 0x759   : > { %v1432_v42 = vpop.eup %1431 }
 0x75a   : > { %v1037_v43 = vmul.f32 %v1432_v42, %v1035_v41  ;;  %vm1043_vm5 = vweird.f32 %v1432_v42 }
 0x75b   : > { %vm1044_vm11 = vmor %vm1042_vm10, %vm1043_vm5 }
 0x75c   : > { %v1038_v44 = vmul.f32 %v1432_v42, %v1037_v43 }
 0x75e   : > { %v1039_v45 = vmul.f32 0.5, %v1038_v44 }
 0x760   : > { %v1040_v47 = vsub.f32 1.5, %v1039_v45 }
 0x762   : > { %v1041_v48 = vmul.f32 %v1432_v42, %v1040_v47 }
 0x764   : > { %v1045_v50 = vsel %vm1044_vm11, %v1432_v42, %v1041_v48 }
 0x765   : > { %v1046_v51 = vmul.f32 %v1045_v50, %v1029_v33 }
 0x767   : > { %v1050_v52 = vmul.f32 %v1407_v49, %v1046_v51 }
 0x769   : > { %v1054_v53 = vadd.f32 %v1408_v8, %v1050_v52 }
 0x76b   : > { %1334 = vmatmul.msk.f32.vlgmr.msrb.gmra.mxu1 %vm518_vm0, %v1054_v53 }
 0x7e8   : > { %v1083_v61 = vpop.f32.mrf.mxu1 }
 0x7e9   : > { %v1084_v63 = vadd.f32 %v1409_v59, %v1083_v61 }
 0x7eb   : > { %v1087_v2 = vmul.f32 0.70710677, %v1084_v63  ;;  %v1086_v42 = vmul.f32 0.5, %v1084_v63 }
 0x7ed   : > { %v1090_v4 = vand.u32 2147483647, %v1087_v2  ;;  %vm1088_vm1 = vcmp.lt.f32.partialorder %v1087_v2, 0.0 }
 0x7ee   : > { %v1089_v40 = vsel %vm1088_vm1, -1.0, %v1546_v39 }
 0x7ef   : > { %v1091_v6 = vmul.f32 0.3275911, %v1090_v4  ;;  %v1117_v23 = vsub.f32 0.0, %v1090_v4 }
 0x7f1   : > { %v1092_v46 = vadd.f32 1.0, %v1091_v6  ;;  %v1118_v27 = vmul.f32 %v1117_v23, %v1090_v4 }
 0x7f3   : > { %1433 = vrcp.f32 %v1092_v46  ;;  %v1104_v17 = vand.u32 2147483648, %v1092_v46  ;;  %v1102_v19 = vand.u32 2147483647, %v1092_v46  ;;  %vm1098_vm13 = vweird.f32 %v1092_v46 }
 0x7f4   : > { %v1119_v31 = vmul.f32 1.442695, %v1118_v27 }
 0x7f5   : > { %v1105_v21 = vor.u32 1.1754944e-38, %v1104_v17  ;;  %vm1103_vm15 = vcmp.eq.f32.partialorder %v1102_v19, 8.507059e+37 }
 0x7f6   : > { %1435 = vpow2.f32 %v1119_v31 }
 0x7f9   : > { %v1434_v13 = vpop.eup %1433 }
 0x7fa   : > { %v1094_v14 = vmul.f32 %v1434_v13, %v1092_v46  ;;  %vm1099_vm12 = vweird.f32 %v1434_v13 }
 0x7fb   : > { %vm1100_vm14 = vmor %vm1098_vm13, %vm1099_vm12 }
 0x7fc   : > { %v1095_v16 = vsub.f32 1.0, %v1094_v14  ;;  %v1436_v0 = vpop.eup %1435 }
 0x7fe   : > { %v1096_v18 = vmul.f32 %v1434_v13, %v1095_v16 }
 0x800   : > { %v1097_v20 = vadd.f32 %v1434_v13, %v1096_v18 }
 0x802   : > { %v1101_v22 = vsel %vm1100_vm14, %v1434_v13, %v1097_v20 }
 0x803   : > { %v1106_v24 = vsel %vm1103_vm15, %v1105_v21, %v1101_v22 }
 0x804   : > { %v1108_v25 = vmul.f32 1.0614054, %v1106_v24 }
 0x806   : > { %v1109_v26 = vadd.f32 -1.4531521, %v1108_v25 }
 0x808   : > { %v1110_v28 = vmul.f32 %v1109_v26, %v1106_v24 }
 0x80a   : > { %v1111_v30 = vadd.f32 1.4214138, %v1110_v28 }
 0x80c   : > { %v1112_v32 = vmul.f32 %v1111_v30, %v1106_v24 }
 0x80e   : > { %v1113_v33 = vadd.f32 -0.28449672, %v1112_v32 }
 0x810   : > { %v1114_v34 = vmul.f32 %v1113_v33, %v1106_v24 }
 0x812   : > { %v1115_v35 = vadd.f32 0.2548296, %v1114_v34 }
 0x814   : > { %v1116_v36 = vmul.f32 %v1115_v35, %v1106_v24 }
 0x816   : > { %v1121_v37 = vmul.f32 %v1436_v0, %v1116_v36 }
 0x818   : > { %v1122_v38 = vsub.f32 1.0, %v1121_v37 }
 0x81a   : > { %v1123_v41 = vmul.f32 %v1122_v38, %v1089_v40 }
 0x81c   : > { %v1124_v43 = vadd.f32 1.0, %v1123_v41 }
 0x81e   : > { %v1125_v44 = vmul.f32 %v1124_v43, %v1086_v42 }
 0x820   : > { %1162 = vmatmul.f32.vlgmr.msrb.gmra.mxu3 %v1125_v44 }
 0x821   : > { %1464 = shalt.err (!%p1461_p3)
}
 0x822   : > { %s1547_s26 = smov 128   ;;  %s1548_s1 = smov 8   ;;  %v1410_v45 = vld [vmem:[%s1954_s13] ss:$0 sm:$0xff] }
 0x823   : > { %1344 = dma.vmem_to_hbm [thread:$0]  (%p1667_p5), %s1201_s0, 512, %s1203_s20, %s1174_s16, %s1547_s26, %s1547_s26, %s1548_s1  }
 0x824   : > { %s1311_s2 = sshll.u32 %s1764_s27, 3  ;;  %s1337_s3 = sshll.u32 %s1650_s22, 3 }
 0x825   : > { %s1184_s30 = scalar_lea.hbm %s1955_s14, %s1337_s3  ;;  %s500_s23 = scalar_lea.vmem [#allocation2], %s1311_s2 }
 0x826   : > { %s1186_s17 = sshll.u32 %s500_s23, 4  ;;  %s1188_s7 = sshll.u32 %s1184_s30, 4  ;;  %s1187_s17 = int_to_ptr.vmem [resolvable:$true] %s1186_s17  ;;  %s1189_s7 = int_to_ptr.hbm [resolvable:$true] %s1188_s7 }
 0x827   : > { %s1169_s22 = scalar_lea.sflag [#allocation3], %s1764_s27  ;;  %s1479_s0 = sshra.s32 %s1189_s7, 4  ;;  %s1480_s0 = int_to_ptr.hbm [resolvable:$true] %s1479_s0 }
 0x828   : > { %s1481_s20 = scalar_lea.hbm %s1480_s0, 8  ;;  %s1485_s1 = scalar_lea.hbm %s1955_s14, 16 }
 0x829   : > { %p1482_p4 = scmp.ne.s32.totalorder %s1480_s0, %s1481_s20  ;;  %p1486_p9 = scmp.lt.s32.totalorder %s1480_s0, %s1955_s14 }
 0x82a   : > { %p1487_p10 = scmp.lt.s32.totalorder %s1485_s1, %s1481_s20 }
 0x82b   : > { %p1483_p7 = pnand %p1482_p4, %p1667_p5 }
 0x82c   : > { %p1488_p11 = por %p1487_p10, %p1486_p9 }
 0x82d   : > { %p1484_p8 = pneg %p1483_p7 }
 0x82f   : > { %p1489_p12 = pnand %p1488_p11, %p1484_p8 }
 0x8a3   : > { %v1163_v47 = vpop.f32.mrf.mxu3 }
 0x8a4   : > { %v1164_v48 = vadd.f32 %v1410_v45, %v1163_v47 }
 0x8a6   : > { %v1166_v49 = vadd.f32 %v1164_v48, %v1809_v29 }
 0x8a8   : > { %1167 = vst.msk [vmem:[%s500_s23] sm:$0xff] %vm518_vm0, %v1166_v49 }
 0x8a9   : > { %1492 = shalt.err (!%p1489_p12)
}
 0x8aa   : > { %1343 = dma.vmem_to_hbm [thread:$0]  (%p1667_p5), %s1187_s17, 128, %s1189_s7, %s1169_s22  }
 0x8ab PF: > { %p1354_p13 = scmp.ge.s32.totalorder %s1531_s21, 2  ;;  %s1217_s27 = sand.u32 1, %s1519_s18  }
 0x8ac   : > { %s1218_s4 = scalar_lea.sflag [#allocation3], %s1217_s27 }
 0x8ad   : > { %p1348_p0 = pnand %p1354_p13, %p1671_p6 }
 0x8af   : > { %p1349_p1 = pneg %p1348_p0 }
 0x8b1   : > { %1510 = dma.done.wait (%p1349_p1), %s1218_s4, 128  }
 0x8b2   : > { %1512 = vsyncadd (%p1349_p1), %s1218_s4, 4294967168  ;;  %s1228_s25 = scalar_lea.sflag [#allocation5], %s1217_s27 }
 0x8b3   : > { %1514 = dma.done.wait (%p1349_p1), %s1228_s25, 512  }
 0x8b4   : > { %1516 = vsyncadd (%p1349_p1), %s1228_s25, 4294966784  ;;  %s1980_s5 = sld [smem:[#allocation8_spill]]  ;;  %p29_p5 = scmp.ge.s32.totalorder %s1654_s24, 4  }
 0x8b5   : > { %s1981_s20 = sld [smem:[#allocation9_spill]]  ;;  %s1982_s18 = smov %s1523_s19 }
 0x8b6   : > { %s1984_s21 = smov %s1654_s24  ;;  %31 = sbr.rel (!%p29_p5) target bundleno = 14 (0xe), region = 134 }
 0x8ba   : > { %s1983_s19 = smov %s1980_s5 }
 0x8bb   :  { %1234 = vsyncpa [#allocation3], 1 }
 0x8bc   :  { %1236 = vsyncpa [#allocation3 + $0x1], 1 }
 0x8bd   :  { %1237 = vsyncpa [#allocation5], 1 }
 0x8be   :  { %1239 = vsyncpa [#allocation5 + $0x1], 1 }

</bundles_post_ra>
